<compile_context>
chip_gen: v5e
topology: v5e:2x2
jax: 0.10.0
libtpu: 0.0.40
codegen_flags: <defaults>
</compile_context>

<pallas_src>
import jax
import jax.numpy as jnp
from jax import lax
from jax.experimental import pallas as pl
from jax.experimental.pallas import tpu as pltpu
import numpy as np


def _make_kernel(q, rr, t_blk, nT, n_hist, C, mode):
    """Kernel body with the static shift decomposition d = q*t_blk + rr baked in.

    mode:
      "zero"  : d >= T_pad  -> shifted input is all zeros, no history scratch
      "local" : q == 0, nT == 1 -> shift handled within the single tile
      "tail"  : q == 0, nT > 1  -> history = last rr columns of previous tile
      "ring"  : 1 <= q < nT     -> history = ring of q+1 pre-rolled full tiles
    """

    def kernel(x_ref, wp_ref, wc_ref, bfg_ref, wrs_ref, brs_ref,
               skip_ref, res_ref, *hist):
        x = x_ref[0]                                   # (C, t_blk) current tile

        # ---- rebuild causally shifted tile xs[:, i] = x_global[:, j*t_blk+i-d] ----
        if mode == "zero":
            xs = jnp.zeros_like(x)

        elif mode == "local":
            col = lax.broadcasted_iota(jnp.int32, (C, t_blk), 1)
            xs = jnp.where(col < rr, jnp.zeros_like(x),
                           pltpu.roll(x, shift=rr, axis=1))

        else:
            hist_ref = hist[0]
            j = pl.program_id(1)

            # Fresh causal history for every batch row (time axis is sequential).
            @pl.when(j == 0)
            def _init():
                hist_ref[...] = jnp.zeros_like(hist_ref)

            if mode == "tail":
                # hist: (C, t_blk); only columns [0, rr) are ever written and they
                # already sit at their target lane positions (pre-shifted tail).
                xr = pltpu.roll(x, shift=rr, axis=1)   # xr[:, i] = x[:, (i-rr) % t_blk]
                col = lax.broadcasted_iota(jnp.int32, (C, t_blk), 1)
                xs = jnp.where(col < rr, hist_ref[...], xr)
                if nT > 1:
                    hist_ref[:, pl.ds(0, rr)] = xr[:, :rr]   # == x[:, t_blk-rr:]

            elif rr == 0:
                # Aligned shift: xs is exactly tile (j - q); ring stores raw tiles.
                # (j + 1) % n_hist == (j - q) mod n_hist  since n_hist == q + 1.
                xs = hist_ref[(j + 1) % n_hist]
                hist_ref[j % n_hist] = x

            else:
                # Unaligned shift: ring stores PRE-ROLLED tiles (rolled by rr).
                # slot j % n_hist     == (j - q - 1) mod n_hist  (oldest, reused)
                # slot (j+1) % n_hist == (j - q)     mod n_hist
                col = lax.broadcasted_iota(jnp.int32, (C, t_blk), 1)
                older = hist_ref[j % n_hist]           # roll(tile j-q-1, rr)
                newer = hist_ref[(j + 1) % n_hist]     # roll(tile j-q,   rr)
                xs = jnp.where(col < rr, older, newer)
                hist_ref[j % n_hist] = pltpu.roll(x, shift=rr, axis=1)

        # ---- fused causal dilated convs (filter + gate): two MXU dots, no concat ----
        fg = (jnp.dot(wp_ref[...], xs, preferred_element_type=jnp.float32)
              + jnp.dot(wc_ref[...], x, preferred_element_type=jnp.float32)
              + bfg_ref[...])                           # (2C, t_blk)
        fx = jnp.tanh(fg[:C]) * jax.nn.sigmoid(fg[C:])  # (C, t_blk)

        # ---- fused 1x1 convs: rows [0:C] -> resconv output, rows [C:] -> skip ----
        rs = jnp.dot(wrs_ref[...], fx,
                     preferred_element_type=jnp.float32) + brs_ref[...]
        skip_ref[0] = rs[C:].astype(skip_ref.dtype)
        res_ref[0] = (rs[:C] + x).astype(res_ref.dtype)

    return kernel


def _pick_t_blk(T_pad, target):
    """Largest multiple of 128 dividing T_pad, capped at `target` (>= 128)."""
    best = 128
    m = 128
    cap = min(T_pad, max(int(target), 128))
    while m <= cap:
        if T_pad % m == 0:
            best = m
        m += 128
    return best


def residual_layer(x_ncl, params, dilation, *, t_blk=8192):
    """x_ncl: (B, C, T) float32. Returns (skip (B, S, T), residual (B, C, T))."""
    B, C, T = x_ncl.shape
    d = int(dilation)
    assert d >= 1, "dilation must be >= 1"

    # Pad T to a multiple of 128 so every output block is lane-dense.
    T_pad = -(-T // 128) * 128
    x_in = x_ncl if T_pad == T else jnp.pad(x_ncl, ((0, 0), (0, 0), (0, T_pad - T)))

    t_blk = _pick_t_blk(T_pad, t_blk)
    nT = T_pad // t_blk
    q, rr = divmod(d, t_blk)

    if q >= nT:                       # shift always lands before t=0
        mode, n_hist = "zero", 0
        hist_shapes = []
    elif q == 0 and nT == 1:
        mode, n_hist = "local", 0
        hist_shapes = []
    elif q == 0:
        mode, n_hist = "tail", 1
        hist_shapes = [pltpu.VMEM((C, t_blk), x_ncl.dtype)]
    else:
        mode, n_hist = "ring", q + 1
        hist_shapes = [pltpu.VMEM((n_hist, C, t_blk), x_ncl.dtype)]

    # --- fused weights (torch Conv1d weight layout is (out, in, k)) ---
    f32 = jnp.float32
    hi = lax.Precision.HIGHEST
    wf = params["wf"].astype(f32)
    wg = params["wg"].astype(f32)
    w_prev = jnp.concatenate([wf[:, :, 0], wg[:, :, 0]], axis=0)     # (2C, C) tap t-d
    w_cur = jnp.concatenate([wf[:, :, 1], wg[:, :, 1]], axis=0)      # (2C, C) tap t
    b_fg = jnp.concatenate([params["bf"], params["bg"]]).astype(f32).reshape(2 * C, 1)

    w_res = params["wres"][:, :, 0].astype(f32)                      # (C, C)
    w_skip = params["wskip"][:, :, 0].astype(f32)                    # (S, C)
    S = w_skip.shape[0]
    w_rs = jnp.concatenate(
        [w_res, jnp.dot(w_skip, w_res, precision=hi)], axis=0)       # (C+S, C)
    b_rs = jnp.concatenate(
        [params["bres"].astype(f32),
         jnp.dot(w_skip, params["bres"].astype(f32), precision=hi)
         + params["bskip"].astype(f32)]).reshape(C + S, 1)

    # --- VMEM budget (double-buffered blocks + history + weights) & cost hint ---
    hist_tiles = n_hist if mode == "ring" else (1 if mode == "tail" else 0)
    vmem_bytes = (4 * t_blk * (2 * C + 2 * C + 2 * S + hist_tiles * C)
                  + 4 * (2 * 2 * C * C + (C + S) * C + 3 * C + S) + (2 << 20))
    vmem_limit = int(min(112 * 2 ** 20, max(32 * 2 ** 20, 2 * vmem_bytes)))

    cost = pl.CostEstimate(
        flops=2 * B * T_pad * C * (4 * C + C + S),
        transcendentals=2 * B * T_pad * C,
        bytes_accessed=4 * B * T_pad * (2 * C + S),
    )

    kernel = _make_kernel(q, rr, t_blk, nT, max(n_hist, 1), C, mode)
    const = lambda r, c: pl.BlockSpec((r, c), lambda b, j: (0, 0))

    skip, residual = pl.pallas_call(
        kernel,
        out_shape=(
            jax.ShapeDtypeStruct((B, S, T_pad), x_ncl.dtype),
            jax.ShapeDtypeStruct((B, C, T_pad), x_ncl.dtype),
        ),
        grid_spec=pltpu.PrefetchScalarGridSpec(
            num_scalar_prefetch=0,
            grid=(B, nT),
            in_specs=[
                pl.BlockSpec((1, C, t_blk), lambda b, j: (b, 0, j)),  # x (read once)
                const(2 * C, C),   # fused conv weights, tap t-d (resident)
                const(2 * C, C),   # fused conv weights, tap t   (resident)
                const(2 * C, 1),   # fused conv bias
                const(C + S, C),   # fused res/skip weights
                const(C + S, 1),   # fused res/skip bias
            ],
            out_specs=[
                pl.BlockSpec((1, S, t_blk), lambda b, j: (b, 0, j)),  # skip
                pl.BlockSpec((1, C, t_blk), lambda b, j: (b, 0, j)),  # residual
            ],
            scratch_shapes=hist_shapes,
        ),
        compiler_params=pltpu.CompilerParams(
            dimension_semantics=("parallel", "arbitrary"),
            vmem_limit_bytes=vmem_limit),
        cost_estimate=cost,
    )(x_in, w_prev, w_cur, b_fg, w_rs, b_rs)

    if T_pad != T:
        skip = skip[..., :T]
        residual = residual[..., :T]
    return skip, residual


def residual_layer_reference(x_ncl, params, dilation):
    """Pure-JAX reference using lax.conv (mirrors torch Conv1d + causal slice)."""
    d = int(dilation)
    T = x_ncl.shape[-1]

    def causal_conv(x, w, b):
        y = lax.conv_general_dilated(
            x, w, window_strides=(1,), padding=[(d, d)],
            rhs_dilation=(d,),
            dimension_numbers=("NCH", "OIH", "NCH"))
        y = y + b[None, :, None]
        return y[..., :T]  # torch: x[..., :-pad]

    def conv1x1(x, w, b):
        y = lax.conv_general_dilated(
            x, w, window_strides=(1,), padding=[(0, 0)],
            dimension_numbers=("NCH", "OIH", "NCH"))
        return y + b[None, :, None]

    f = causal_conv(x_ncl, params["wf"], params["bf"])
    g = causal_conv(x_ncl, params["wg"], params["bg"])
    fx = jnp.tanh(f) * jax.nn.sigmoid(g)
    fx = conv1x1(fx, params["wres"], params["bres"])
    skip = conv1x1(fx, params["wskip"], params["bskip"])
    residual = fx + x_ncl
    return skip, residual


if __name__ == "__main__":
    B, C, S = 2, 16, 32   # residual_size=16, skip_size=32

    key = jax.random.PRNGKey(0)
    ks = jax.random.split(key, 10)
    scale = 0.1
    params = {
        "wf":    scale * jax.random.normal(ks[0], (C, C, 2), jnp.float32),
        "bf":    scale * jax.random.normal(ks[1], (C,), jnp.float32),
        "wg":    scale * jax.random.normal(ks[2], (C, C, 2), jnp.float32),
        "bg":    scale * jax.random.normal(ks[3], (C,), jnp.float32),
        "wres":  scale * jax.random.normal(ks[4], (C, C, 1), jnp.float32),
        "bres":  scale * jax.random.normal(ks[5], (C,), jnp.float32),
        "wskip": scale * jax.random.normal(ks[6], (S, C, 1), jnp.float32),
        "bskip": scale * jax.random.normal(ks[7], (S,), jnp.float32),
    }

    # (T, dilation, t_blk cap) covering every static code path:
    #   "local" (single tile), "ring" unaligned, "ring" aligned, "zero" (d >= T),
    #   and "tail" (multi-tile, q=0) with T not a multiple of 128 (padding path).
    cases = [
        (1024,    2, 8192),
        (1024,  600,  256),
        (1024,  256,  256),
        (1024, 5000,  512),
        (1000,    7,  512),
    ]
    for T, dil, blk in cases:
        x = jax.random.normal(jax.random.fold_in(ks[9], 131 * T + dil),
                              (B, C, T), jnp.float32)
        skip, residual = residual_layer(x, params, dil, t_blk=blk)
        jax.block_until_ready((skip, residual))
        skip_ref, res_ref = residual_layer_reference(x, params, dil)
        np.testing.assert_allclose(np.asarray(skip), np.asarray(skip_ref),
                                   atol=1e-4, rtol=1e-4)
        np.testing.assert_allclose(np.asarray(residual), np.asarray(res_ref),
                                   atol=1e-4, rtol=1e-4)

    print("KERNEL_OK")
</pallas_src>

<mosaic_0001>
module attributes {stable_mosaic.version = 11 : i64} {
  func.func @kernel(%arg0: i32, %arg1: i32, %arg2: memref<1x16x1024xf32, #tpu.memory_space<vmem>>, %arg3: memref<32x16xf32, #tpu.memory_space<vmem>>, %arg4: memref<32x16xf32, #tpu.memory_space<vmem>>, %arg5: memref<32x1xf32, #tpu.memory_space<vmem>>, %arg6: memref<48x16xf32, #tpu.memory_space<vmem>>, %arg7: memref<48x1xf32, #tpu.memory_space<vmem>>, %arg8: memref<1x32x1024xf32, #tpu.memory_space<vmem>>, %arg9: memref<1x16x1024xf32, #tpu.memory_space<vmem>>) attributes {dimension_semantics = [#tpu.dimension_semantics<parallel>, #tpu.dimension_semantics<arbitrary>], iteration_bounds = array<i64: 2, 1>, scalar_prefetch = 0 : i64, scratch_operands = 0 : i64, tpu.core_type = #tpu.core_type<tc>, window_params = [{transform_indices = @transform_0, window_bounds = array<i64: 1, 16, 1024>}, {pipeline_mode = #tpu.pipeline_mode<synchronous>, transform_indices = @transform_1, window_bounds = array<i64: 32, 16>}, {pipeline_mode = #tpu.pipeline_mode<synchronous>, transform_indices = @transform_2, window_bounds = array<i64: 32, 16>}, {pipeline_mode = #tpu.pipeline_mode<synchronous>, transform_indices = @transform_3, window_bounds = array<i64: 32, 1>}, {pipeline_mode = #tpu.pipeline_mode<synchronous>, transform_indices = @transform_4, window_bounds = array<i64: 48, 16>}, {pipeline_mode = #tpu.pipeline_mode<synchronous>, transform_indices = @transform_5, window_bounds = array<i64: 48, 1>}, {transform_indices = @transform_6, window_bounds = array<i64: 1, 32, 1024>}, {transform_indices = @transform_7, window_bounds = array<i64: 1, 16, 1024>}]} {
    %c0 = arith.constant 0 : index
    %c0_0 = arith.constant 0 : index
    %c0_1 = arith.constant 0 : index
    %0 = vector.load %arg2[%c0, %c0_0, %c0_1] : memref<1x16x1024xf32, #tpu.memory_space<vmem>>, vector<1x16x1024xf32>
    %1 = vector.shape_cast %0 : vector<1x16x1024xf32> to vector<16x1024xf32>
    %2 = tpu.iota {dimensions = array<i32: 1>} : vector<16x1024xi32>
    %c2_i32 = arith.constant 2 : i32
    %3 = vector.broadcast %c2_i32 : i32 to vector<16x1024xi32>
    %4 = arith.cmpi slt, %2, %3 : vector<16x1024xi32>
    %cst = arith.constant 0.000000e+00 : f32
    %5 = vector.broadcast %cst : f32 to vector<16x1024xf32>
    %c2_i32_2 = arith.constant 2 : i32
    %6 = tpu.dynamic_rotate %1 by %c2_i32_2 dim 1 : vector<16x1024xf32>, i32 -> vector<16x1024xf32>
    %7 = arith.select %4, %5, %6 : vector<16x1024xi1>, vector<16x1024xf32>
    %c0_3 = arith.constant 0 : index
    %c0_4 = arith.constant 0 : index
    %8 = vector.load %arg3[%c0_3, %c0_4] : memref<32x16xf32, #tpu.memory_space<vmem>>, vector<32x16xf32>
    %cst_5 = arith.constant dense<0.000000e+00> : vector<32x1024xf32>
    %9 = tpu.matmul %8, %7, %cst_5 {dimension_numbers = #tpu.dot_dimension_numbers<[1], [0], [0], [1], [0, 0, 1, 1], [], []>} : vector<32x16xf32>, vector<16x1024xf32>, vector<32x1024xf32> -> vector<32x1024xf32>
    %c0_6 = arith.constant 0 : index
    %c0_7 = arith.constant 0 : index
    %10 = vector.load %arg4[%c0_6, %c0_7] : memref<32x16xf32, #tpu.memory_space<vmem>>, vector<32x16xf32>
    %cst_8 = arith.constant dense<0.000000e+00> : vector<32x1024xf32>
    %11 = tpu.matmul %10, %1, %cst_8 {dimension_numbers = #tpu.dot_dimension_numbers<[1], [0], [0], [1], [0, 0, 1, 1], [], []>} : vector<32x16xf32>, vector<16x1024xf32>, vector<32x1024xf32> -> vector<32x1024xf32>
    %12 = arith.addf %9, %11 : vector<32x1024xf32>
    %c0_9 = arith.constant 0 : index
    %c0_10 = arith.constant 0 : index
    %13 = vector.load %arg5[%c0_9, %c0_10] : memref<32x1xf32, #tpu.memory_space<vmem>>, vector<32x1xf32>
    %14 = vector.broadcast %13 : vector<32x1xf32> to vector<32x1024xf32>
    %15 = arith.addf %12, %14 : vector<32x1024xf32>
    %16 = vector.extract_strided_slice %15 {offsets = [0, 0], sizes = [16, 1024], strides = [1, 1]} : vector<32x1024xf32> to vector<16x1024xf32>
    %17 = math.tanh %16 : vector<16x1024xf32>
    %18 = vector.extract_strided_slice %15 {offsets = [16, 0], sizes = [16, 1024], strides = [1, 1]} : vector<32x1024xf32> to vector<16x1024xf32>
    %19 = arith.negf %18 : vector<16x1024xf32>
    %20 = math.exp %19 : vector<16x1024xf32>
    %cst_11 = arith.constant 1.000000e+00 : f32
    %21 = vector.broadcast %cst_11 : f32 to vector<16x1024xf32>
    %22 = arith.addf %21, %20 : vector<16x1024xf32>
    %23 = arith.divf %21, %22 : vector<16x1024xf32>
    %24 = arith.mulf %17, %23 : vector<16x1024xf32>
    %c0_12 = arith.constant 0 : index
    %c0_13 = arith.constant 0 : index
    %25 = vector.load %arg6[%c0_12, %c0_13] : memref<48x16xf32, #tpu.memory_space<vmem>>, vector<48x16xf32>
    %cst_14 = arith.constant dense<0.000000e+00> : vector<48x1024xf32>
    %26 = tpu.matmul %25, %24, %cst_14 {dimension_numbers = #tpu.dot_dimension_numbers<[1], [0], [0], [1], [0, 0, 1, 1], [], []>} : vector<48x16xf32>, vector<16x1024xf32>, vector<48x1024xf32> -> vector<48x1024xf32>
    %c0_15 = arith.constant 0 : index
    %c0_16 = arith.constant 0 : index
    %27 = vector.load %arg7[%c0_15, %c0_16] : memref<48x1xf32, #tpu.memory_space<vmem>>, vector<48x1xf32>
    %28 = vector.broadcast %27 : vector<48x1xf32> to vector<48x1024xf32>
    %29 = arith.addf %26, %28 : vector<48x1024xf32>
    %30 = vector.extract_strided_slice %29 {offsets = [16, 0], sizes = [32, 1024], strides = [1, 1]} : vector<48x1024xf32> to vector<32x1024xf32>
    %c0_17 = arith.constant 0 : index
    %c0_18 = arith.constant 0 : index
    %c0_19 = arith.constant 0 : index
    %31 = vector.load %arg8[%c0_17, %c0_18, %c0_19] : memref<1x32x1024xf32, #tpu.memory_space<vmem>>, vector<1x32x1024xf32>
    %32 = vector.shape_cast %31 : vector<1x32x1024xf32> to vector<32x1024xf32>
    %33 = vector.shape_cast %30 : vector<32x1024xf32> to vector<1x32x1024xf32>
    tpu.vector_store %arg8[%c0_17, %c0_18, %c0_19], %33 {strides = array<i32>} : memref<1x32x1024xf32, #tpu.memory_space<vmem>>, vector<1x32x1024xf32>,
    %34 = vector.extract_strided_slice %29 {offsets = [0, 0], sizes = [16, 1024], strides = [1, 1]} : vector<48x1024xf32> to vector<16x1024xf32>
    %35 = arith.addf %34, %1 : vector<16x1024xf32>
    %c0_20 = arith.constant 0 : index
    %c0_21 = arith.constant 0 : index
    %c0_22 = arith.constant 0 : index
    %36 = vector.load %arg9[%c0_20, %c0_21, %c0_22] : memref<1x16x1024xf32, #tpu.memory_space<vmem>>, vector<1x16x1024xf32>
    %37 = vector.shape_cast %36 : vector<1x16x1024xf32> to vector<16x1024xf32>
    %38 = vector.shape_cast %35 : vector<16x1024xf32> to vector<1x16x1024xf32>
    tpu.vector_store %arg9[%c0_20, %c0_21, %c0_22], %38 {strides = array<i32>} : memref<1x16x1024xf32, #tpu.memory_space<vmem>>, vector<1x16x1024xf32>,
    return
  }
  func.func @transform_0(%arg0: i32, %arg1: i32) -> (i32, i32, i32) {
    %c0_i32 = arith.constant 0 : i32
    %c0_i32_0 = arith.constant 0 : i32
    return %arg0, %c0_i32, %arg1 : i32, i32, i32
  }
  func.func @transform_1(%arg0: i32, %arg1: i32) -> (i32, i32) {
    %c0_i32 = arith.constant 0 : i32
    %c0_i32_0 = arith.constant 0 : i32
    %c0_i32_1 = arith.constant 0 : i32
    return %c0_i32, %c0_i32_0 : i32, i32
  }
  func.func @transform_2(%arg0: i32, %arg1: i32) -> (i32, i32) {
    %c0_i32 = arith.constant 0 : i32
    %c0_i32_0 = arith.constant 0 : i32
    %c0_i32_1 = arith.constant 0 : i32
    return %c0_i32, %c0_i32_0 : i32, i32
  }
  func.func @transform_3(%arg0: i32, %arg1: i32) -> (i32, i32) {
    %c0_i32 = arith.constant 0 : i32
    %c0_i32_0 = arith.constant 0 : i32
    %c0_i32_1 = arith.constant 0 : i32
    return %c0_i32, %c0_i32_0 : i32, i32
  }
  func.func @transform_4(%arg0: i32, %arg1: i32) -> (i32, i32) {
    %c0_i32 = arith.constant 0 : i32
    %c0_i32_0 = arith.constant 0 : i32
    %c0_i32_1 = arith.constant 0 : i32
    return %c0_i32, %c0_i32_0 : i32, i32
  }
  func.func @transform_5(%arg0: i32, %arg1: i32) -> (i32, i32) {
    %c0_i32 = arith.constant 0 : i32
    %c0_i32_0 = arith.constant 0 : i32
    %c0_i32_1 = arith.constant 0 : i32
    return %c0_i32, %c0_i32_0 : i32, i32
  }
  func.func @transform_6(%arg0: i32, %arg1: i32) -> (i32, i32, i32) {
    %c0_i32 = arith.constant 0 : i32
    %c0_i32_0 = arith.constant 0 : i32
    return %arg0, %c0_i32, %arg1 : i32, i32, i32
  }
  func.func @transform_7(%arg0: i32, %arg1: i32) -> (i32, i32, i32) {
    %c0_i32 = arith.constant 0 : i32
    %c0_i32_0 = arith.constant 0 : i32
    return %arg0, %c0_i32, %arg1 : i32, i32, i32
  }
}

</mosaic_0001>

<bundles_post_ra>
// kernel: tpu_custom_call.1
= control target key start
LH: loop header
LB: loop body
LE: loop exit
PB: predicated region body
PF: predicated region fallthrough
CT: control target
= control target key end

     0   :  { %13 = vsyncpa [#allocation3], 0  ;;  %s3540_s0 = inlined_call_operand.hbm [shape: f32[2,16,1024], index: 0, kind: input, shape index: {}]   ;;  %s3541_s1 = inlined_call_operand.vmem [shape: f32[32,16], index: 1, kind: input, shape index: {}]   ;;  %s3542_s2 = inlined_call_operand.vmem [shape: f32[32,16], index: 2, kind: input, shape index: {}]   ;;  %s3543_s3 = inlined_call_operand.vmem [shape: f32[32,1], index: 3, kind: input, shape index: {}]   ;;  %s3544_s4 = inlined_call_operand.vmem [shape: f32[48,16], index: 4, kind: input, shape index: {}]   ;;  %s3545_s5 = inlined_call_operand.vmem [shape: f32[48,1], index: 5, kind: input, shape index: {}]   ;;  %s3546_s6 = inlined_call_operand.hbm [shape: f32[2,32,1024], index: 6, kind: output, shape index: {0}]   ;;  %s3547_s7 = inlined_call_operand.hbm [shape: f32[2,16,1024], index: 7, kind: output, shape index: {1}]  }
   0x1   :  { %15 = vsyncpa [#allocation3 + $0x1], 0 }
   0x2   :  { %16 = vsyncpa [#allocation4], 0 }
   0x3   :  { %18 = vsyncpa [#allocation4 + $0x1], 0 }
   0x4   :  { %19 = vsyncpa [#allocation7], 0 }
   0x5   :  { %21 = vsyncpa [#allocation7 + $0x1], 0  ;;  %s2452_s24 = smov 0   ;;  %s2454_s25 = smov 0  }
   0x6   :  { %s2456_s26 = smov 0   ;;  %s2458_s27 = smov 0  }
   0x7   :  { %s2460_s28 = smov 0   ;;  %s2462_s29 = smov 0  }
   0x8 LB: > { %3550 = sst [smem:[#allocation11_spill]] %s2400_s28  ;;  %s1888_s30 = sadd.s32 4294967295, %s2404_s29   ;;  %s2404_s29 = sphi %s2462_s29, %s27_s29   ;;  %s2400_s28 = sphi %s2460_s28, %s3577_s28   ;;  %s2396_s27 = sphi %s2458_s27, %s3576_s27   ;;  %s2392_s26 = sphi %s2456_s26, %s3580_s26   ;;  %s2388_s25 = sphi %s2454_s25, %s3579_s25   ;;  %s2384_s24 = sphi %s2452_s24, %s3578_s24  }
   0x9   : > { %s1889_s8 = sadd.s32 4294967294, %s2404_s29   ;;  %s39_s9 = sadd.s32 1, %s2400_s28 }
   0xa   : > { %s48_s10 = sadd.s32 1, %s2392_s26  ;;  %p41_p0 = scmp.ge.s32.totalorder %s39_s9, 2 }
   0xb   : > { %p55_p1 = scmp.ne.s32.totalorder %s2392_s26, %s2388_s25  ;;  %p56_p2 = scmp.eq.s32.totalorder %s2404_s29, 0 }
   0xc   : > { %p61_p3 = scmp.ne.s32.totalorder %s2388_s25, %s2384_s24  ;;  %s3582_s9 = smov (%p41_p0, %s39_s9), 0 }
   0xd   : > { %3551 = sst [smem:[#allocation12_spill]] %s3582_s9  ;;  %p2493_p4 = por %p56_p2, %p55_p1 }
   0xe   : > { %p62_p5 = scmp.eq.s32.totalorder %s1888_s30, 0  ;;  %s43_s12 = ssub.s32 %s2400_s28, %s3582_s9 }
   0xf   : > { %p192_p6 = scmp.eq.s32.totalorder %s1888_s30, 1  ;;  %p46_p7 = scmp.eq.s32.totalorder %s43_s12, 0 }
  0x10   : > { %p2499_p8 = por %p62_p5, %p61_p3  ;;  %p198_p10 = scmp.eq.s32.totalorder %s1889_s8, 1 }
  0x11   : > { %p2503_p9 = por %p192_p6, %p55_p1  ;;  %p1891_p12 = scmp.ge.s32.totalorder %s2404_s29, 2 }
  0x12   : > { %s2508_s15 = scalar_select %p46_p7, %s2392_s26, %s48_s10  }
  0x13   : > { %p2510_p11 = por %p198_p10, %p61_p3  ;;  %p2059_p13 = scmp.lt.s32.totalorder %s2404_s29, 2 }
  0x14   : > { %s261_s17 = sand.u32 1, %s2392_s26   ;;  %s2039_s19 = sshll.u32 %s2400_s28, 7 }
  0x15   : > { %s1892_s18 = sshll.u32 %s261_s17, 7  ;;  %s272_s22 = scalar_lea.hbm %s3540_s0, %s2039_s19 }
  0x16   : > { %s265_s23 = scalar_lea.vmem [#allocation2], %s1892_s18  ;;  %s273_s12 = sshll.u32 %s272_s22, 4  ;;  %s274_s12 = int_to_ptr.hbm [resolvable:$true] %s273_s12 }
  0x17   : > { %s275_s30 = sshll.u32 %s265_s23, 4  ;;  %p2049_p0 = pnand %p2059_p13, %p2493_p4  ;;  %s276_s30 = int_to_ptr.vmem [resolvable:$true] %s275_s30 }
  0x18   : > { %p1895_p1 = scmp.ge.s32.totalorder %s2404_s29, 1  ;;  %s262_s8 = scalar_lea.sflag [#allocation3], %s261_s17 }
  0x19   : > { %s2406_s10 = smov 1024   ;;  %s2407_s9 = smov 64  }
  0x1a   : > { %2051 = dma.hbm_to_vmem [thread:$0]  (!%p2049_p0), %s274_s12, 2048, %s276_s30, %s262_s8, %s2406_s10, %s2406_s10, %s2407_s9  }
  0x1b   : > { %p283_p2 = scmp.lt.s32.totalorder %s2404_s29, 3 }
  0x1d   : > { %p284_p3 = pnand %p1895_p1, %p283_p2 }
  0x1e   : > { %s2526_s28 = sand.u32 (!%p284_p3), 1, %s2388_s25  }
  0x1f   : > { %287 = sbr.rel (%p284_p3) target bundleno = 607 (0x25f), region = 44  ;;  %s1896_s18 = sshll.u32 (!%p284_p3), %s2526_s28, 7 }
  0x20   : > { %s290_s19 = scalar_lea.sflag (!%p284_p3), [#allocation3], %s2526_s28  ;;  %s2532_s11 = scalar_lea.vmem (!%p284_p3), [#allocation2], %s1896_s18 }
  0x24   : > { %2371 = dma.done.wait (%p2499_p8), %s290_s19, 2048  }
  0x25   : > { %2373 = vsyncadd (%p2499_p8), %s290_s19, 4294965248  ;;  %v342_v0 = vld [vmem:[%s2532_s11 + $0x48] sm:$0xff]  ;;  %v343_v1 = vld [vmem:[%s2532_s11 + $0x50] sm:$0xff]  ;;  %s2408_s9 = smov 2   ;;  %vm438_vm0 = vcmask 130048   ;;  %v2409_v26 = vmov 0   ;;  %v349_v28 = vlaneseq }
  0x26   : > { %v335_v2 = vld [vmem:[%s2532_s11 + $0x10] sm:$0xff]  ;;  %v2115_v3 = vpack.i.bf16 %v343_v1, %v342_v0  ;;  %v336_v4 = vld [vmem:[%s2532_s11 + $0x18] sm:$0xff]  ;;  %v341_v5 = vld [vmem:[%s2532_s11 + $0x40] sm:$0xff]  ;;  %494 = vmatpush.msra.mxu1 %v342_v0  ;;  %523 = vmatpush.msra.mxu2 %v343_v1  ;;  %s3354_s13 = scalar_lea.vmem [#allocation6], %s1896_s18  ;;  %s1897_s17 = sshll.u32 %s2526_s28, 8 }
  0x27   : > { %v2125_v6 = vpack.i.bf16 %v336_v4, %v335_v2  ;;  %v334_v7 = vld [vmem:[%s2532_s11 + $0x8] sm:$0xff]  ;;  %465 = vmatpush.msra.mxu0 %v341_v5  ;;  %v344_v8 = vld [vmem:[%s2532_s11 + $0x58] sm:$0xff]  ;;  %v434_v10 = vld [vmem:[%s3542_s2] sm:$0xff]  ;;  %2145 = vset.pattern.permute.xlu1 %v2409_v26  ;;  %v2614_v31 = vand.u32 127, %v349_v28  ;;  %s3369_s18 = scalar_lea.vmem [#allocation5], %s1897_s17  ;;  %s2041_s20 = sshll.u32 %s2396_s27, 7 }
  0x28   : > { %2116 = vrot.lane.b32.xlu0 %v2115_v3, %s2408_s9  ;;  %495 = vmatpush.msra.mxu1 %v334_v7  ;;  %v348_v9 = vld [vmem:[%s2532_s11 + $0x78] sm:$0xff]  ;;  %v333_v11 = vld [vmem:[%s2532_s11] sm:$0xff]  ;;  %v2120_v12 = vpack.i.bf16 %v334_v7, %v344_v8  ;;  %v346_v13 = vld [vmem:[%s2532_s11 + $0x68] sm:$0xff]  ;;  %s1761_s23 = scalar_lea.hbm %s3547_s7, %s2041_s20  ;;  %s1762_s30 = sshll.u32 %s3354_s13, 4  ;;  %s1763_s30 = int_to_ptr.vmem [resolvable:$true] %s1762_s30 }
  0x29   : > { %2126 = vrot.lane.b32.xlu1 %v2125_v6, %s2408_s9  ;;  %524 = vmatpush.msra.mxu2 %v335_v2  ;;  %v347_v14 = vld [vmem:[%s2532_s11 + $0x70] sm:$0xff]  ;;  %v345_v15 = vld [vmem:[%s2532_s11 + $0x60] sm:$0xff]  ;;  %v338_v16 = vld [vmem:[%s2532_s11 + $0x28] sm:$0xff]  ;;  %vm358_vm1 = vcmp.lt.s32.totalorder %v2614_v31, 2  ;;  %s1764_s12 = sshll.u32 %s1761_s23, 4  ;;  %s1729_s8 = scalar_lea.sflag [#allocation7], %s2526_s28  ;;  %s1765_s12 = int_to_ptr.hbm [resolvable:$true] %s1764_s12 }
  0x2a   : > { %396 = vrot.lane.b32.xlu2 %v348_v9, %s2408_s9  ;;  %552 = vmatpush.msra.mxu3 %v344_v8  ;;  %v339_v17 = vld [vmem:[%s2532_s11 + $0x30] sm:$0xff]  ;;  %v435_v18 = vld [vmem:[%s3542_s2 + $0x8] sm:$0xff]  ;;  %v340_v19 = vld [vmem:[%s2532_s11 + $0x38] sm:$0xff]  ;;  %v2130_v21 = vpack.i.bf16 %v347_v14, %v346_v13  ;;  %s2304_s10 = sshra.s32 %s1765_s12, 4  ;;  %s2305_s10 = int_to_ptr.hbm [resolvable:$true] %s2304_s10 }
  0x2b   : > { %1903 = vmatmul.msk.f32.vlgmr.msra.gmra.mxu1 %vm438_vm0, %v434_v10  ;;  %1907 = vmatmul.msk.f32.vlgmr.msra.gmra.mxu2 %vm438_vm0, %v434_v10  ;;  %v337_v20 = vld [vmem:[%s2532_s11 + $0x20] sm:$0xff]  ;;  %v2135_v22 = vpack.i.bf16 %v339_v17, %v338_v16  ;;  %v436_v23 = vld [vmem:[%s3542_s2 + $0x10] sm:$0xff]  ;;  %v437_v25 = vld [vmem:[%s3542_s2 + $0x18] sm:$0xff]  ;;  %s2306_s19 = scalar_lea.hbm %s2305_s10, 128  ;;  %p2311_p7 = scmp.lt.s32.totalorder %s2305_s10, %s3547_s7 }
  0x2c   : > { %553 = vmatpush.msra.mxu3 %v336_v4  ;;  %466 = vmatpush.msra.mxu0 %v333_v11  ;;  %v2140_v24 = vpack.i.bf16 %v337_v20, %v345_v15  ;;  %v930_v27 = vld [vmem:[%s3543_s3 + $0x18] sm:$0xff]  ;;  %v927_v29 = vld [vmem:[%s3543_s3] sm:$0xff]  ;;  %v928_v32 = vld [vmem:[%s3543_s3 + $0x8] sm:$0xff]  ;;  %p2307_p4 = scmp.ne.s32.totalorder %s2305_s10, %s2306_s19 }
  0x2d   : > { %1911 = vmatmul.msk.f32.vlgmr.msra.gmra.mxu3 %vm438_vm0, %v434_v10  ;;  %1899 = vmatmul.msk.f32.vlgmr.msra.gmra.mxu0 %vm438_vm0, %v434_v10  ;;  %vm2628_vm2 = vmneg %vm358_vm1  ;;  %v2639_v48 = vld [vmem:[%s3541_s1] sm:$0xff]  ;;  %v1326_v54 = vld [vmem:[%s3545_s5 + $0x8] sm:$0xff] }
  0x2e   : > { %610 = vmatpush.msrb.mxu1 %v346_v13  ;;  %639 = vmatpush.msrb.mxu2 %v347_v14  ;;  %v431_v62 = vld [vmem:[%s3541_s1 + $0x8] sm:$0xff]  ;;  %v1329_v3 = vld [vmem:[%s3545_s5 + $0x20] sm:$0xff]  ;;  %v432_v7 = vld [vmem:[%s3541_s1 + $0x10] sm:$0xff]  ;;  %p2308_p5 = pnand %p2307_p4, %p2503_p9 }
  0x2f   : > { %668 = vmatpush.msrb.mxu3 %v348_v9  ;;  %581 = vmatpush.msrb.mxu0 %v345_v15  ;;  %v433_v13 = vld [vmem:[%s3541_s1 + $0x18] sm:$0xff]  ;;  %v1325_v14 = vld [vmem:[%s3545_s5] sm:$0xff] }
  0x30   : > { %2121 = vrot.lane.b32.xlu0 %v2120_v12, %s2408_s9  ;;  %611 = vmatpush.msrb.mxu1 %v338_v16  ;;  %v1328_v15 = vld [vmem:[%s3545_s5 + $0x18] sm:$0xff]  ;;  %v1327_v16 = vld [vmem:[%s3545_s5 + $0x10] sm:$0xff]  ;;  %p2309_p6 = pneg %p2308_p5 }
  0x31   : > { %368 = vrot.lane.b32.xlu1 %v341_v5, %s2408_s9  ;;  %640 = vmatpush.msrb.mxu2 %v339_v17  ;;  %v1330_v17 = vld [vmem:[%s3545_s5 + $0x28] sm:$0xff] }
  0x32   : > { %366 = vrot.lane.b32.xlu2 %v333_v11, %s2408_s9  ;;  %669 = vmatpush.msrb.mxu3 %v340_v19  ;;  %v929_v11 = vld [vmem:[%s3543_s3 + $0x10] sm:$0xff] }
  0x33   : > { %1904 = vmatmul.msk.f32.gmra.mxu1 %vm438_vm0, %v435_v18  ;;  %1908 = vmatmul.msk.f32.gmra.mxu2 %vm438_vm0, %v435_v18 }
  0x34   : > { %582 = vmatpush.msrb.mxu0 %v337_v20  ;;  %2147 = vset.pattern.permute.xlu0 %v2409_v26 }
  0x35   : > { %1912 = vmatmul.msk.f32.gmra.mxu3 %vm438_vm0, %v435_v18  ;;  %1900 = vmatmul.msk.f32.gmra.mxu0 %vm438_vm0, %v435_v18 }
  0x36   : > { %2146 = vset.pattern.permute.xlu2 %v2409_v26 }
  0x38   : > { %394 = vrot.lane.b32.xlu0 %v340_v19, %s2408_s9 }
  0x39   : > { %2131 = vrot.lane.b32.xlu1 %v2130_v21, %s2408_s9 }
  0x3a   : > { %2136 = vrot.lane.b32.xlu2 %v2135_v22, %s2408_s9 }
  0x3b   : > { %1905 = vmatmul.msk.f32.gmra.mxu1 %vm438_vm0, %v436_v23  ;;  %1909 = vmatmul.msk.f32.gmra.mxu2 %vm438_vm0, %v436_v23 }
  0x3d   : > { %1913 = vmatmul.msk.f32.gmra.mxu3 %vm438_vm0, %v436_v23  ;;  %1901 = vmatmul.msk.f32.gmra.mxu0 %vm438_vm0, %v436_v23 }
  0x40   : > { %2141 = vrot.lane.b32.xlu0 %v2140_v24, %s2408_s9 }
  0x41   : > { %948 = vperm.xlu1 %2145, %v930_v27  }
  0x42   : > { %943 = vperm.xlu2 %2146, %v929_v11  }
  0x43   : > { %1906 = vmatmul.msk.f32.gmra.mxu1 %vm438_vm0, %v437_v25  ;;  %1910 = vmatmul.msk.f32.gmra.mxu2 %vm438_vm0, %v437_v25 }
  0x45   : > { %1914 = vmatmul.msk.f32.gmra.mxu3 %vm438_vm0, %v437_v25  ;;  %1902 = vmatmul.msk.f32.gmra.mxu0 %vm438_vm0, %v437_v25 }
  0x48   : > { %938 = vperm.xlu0 %2147, %v928_v32  }
  0x49   : > { %933 = vperm.xlu1 %2145, %v927_v29  }
  0x4a   : > { %1333 = vperm.xlu2 %2146, %v1325_v14  }
  0x4b   : > { %1919 = vmatmul.msk.f32.vlgmr.msrb.gmra.mxu1 %vm438_vm0, %v434_v10  ;;  %1923 = vmatmul.msk.f32.vlgmr.msrb.gmra.mxu2 %vm438_vm0, %v434_v10 }
  0x4d   : > { %1927 = vmatmul.msk.f32.vlgmr.msrb.gmra.mxu3 %vm438_vm0, %v434_v10  ;;  %1915 = vmatmul.msk.f32.vlgmr.msrb.gmra.mxu0 %vm438_vm0, %v434_v10 }
  0x50   : > { %1348 = vperm.xlu0 %2147, %v1328_v15  }
  0x51   : > { %1338 = vperm.xlu1 %2145, %v1326_v54  }
  0x52   : > { %1343 = vperm.xlu2 %2146, %v1327_v16  }
  0x53   : > { %1920 = vmatmul.msk.f32.gmra.mxu1 %vm438_vm0, %v435_v18  ;;  %1924 = vmatmul.msk.f32.gmra.mxu2 %vm438_vm0, %v435_v18 }
  0x55   : > { %1928 = vmatmul.msk.f32.gmra.mxu3 %vm438_vm0, %v435_v18  ;;  %1916 = vmatmul.msk.f32.gmra.mxu0 %vm438_vm0, %v435_v18 }
  0x59   : > { %1353 = vperm.xlu1 %2145, %v1329_v3  }
  0x5a   : > { %1358 = vperm.xlu2 %2146, %v1330_v17  }
  0x5b   : > { %1921 = vmatmul.msk.f32.gmra.mxu1 %vm438_vm0, %v436_v23  ;;  %1925 = vmatmul.msk.f32.gmra.mxu2 %vm438_vm0, %v436_v23 }
  0x5d   : > { %1929 = vmatmul.msk.f32.gmra.mxu3 %vm438_vm0, %v436_v23  ;;  %1917 = vmatmul.msk.f32.gmra.mxu0 %vm438_vm0, %v436_v23 }
  0x63   : > { %1922 = vmatmul.msk.f32.gmra.mxu1 %vm438_vm0, %v437_v25  ;;  %1926 = vmatmul.msk.f32.gmra.mxu2 %vm438_vm0, %v437_v25 }
  0x65   : > { %1930 = vmatmul.msk.f32.gmra.mxu3 %vm438_vm0, %v437_v25  ;;  %1918 = vmatmul.msk.f32.gmra.mxu0 %vm438_vm0, %v437_v25 }
  0x84   : > { %v397_v30 = vpop.permute.xlu2 %396 }
  0x8c   : > { %v367_v39 = vpop.permute.xlu2 %366 }
  0x94   : > { %v2137_v53 = vpop.permute.xlu2 %2136 }
  0x95   : > { %v2139_v58 = vunpack.i.h.bf16 %v2137_v53  ;;  %v2138_v59 = vunpack.i.l.bf16 %v2137_v53 }
  0x97   : > { %v400_v2 = vsel %vm358_vm1, %v2138_v59, %v2139_v58 }
  0x9a   : > { %v2117_v33 = vpop.permute.xlu0 %2116 }
  0x9b   : > { %v2119_v34 = vunpack.i.h.bf16 %v2117_v33  ;;  %v2118_v35 = vunpack.i.l.bf16 %v2117_v33  ;;  %v2620_v36 = vpop.permute.xlu1 %2126 }
  0x9c   : > { %v2129_v38 = vunpack.i.h.bf16 %v2620_v36  ;;  %v2128_v40 = vunpack.i.l.bf16 %v2620_v36 }
  0x9d   : > { %v409_v37 = vsel %vm358_vm1, %v2118_v35, %v2119_v34 }
  0x9e   : > { %767 = vmatpush.msra.mxu2 %v409_v37  ;;  %v406_v49 = vsel %vm358_vm1, %v2128_v40, %v2129_v38 }
  0xa2   : > { %v2122_v41 = vpop.permute.xlu0 %2121 }
  0xa3   : > { %v369_v43 = vpop.permute.xlu1 %368  ;;  %v2124_v44 = vunpack.i.h.bf16 %v2122_v41  ;;  %v2123_v45 = vunpack.i.l.bf16 %v2122_v41 }
  0xa4   : > { %v411_v46 = vsel %vm358_vm1, %v369_v43, %v2118_v35  ;;  %v413_v47 = vsel %vm358_vm1, %v397_v30, %v369_v43 }
  0xa5   : > { %738 = vmatpush.msra.mxu1 %v411_v46  ;;  %v410_v50 = vsel %vm358_vm1, %v367_v39, %v2124_v44  ;;  %v408_v51 = vsel %vm358_vm1, %v2124_v44, %v2128_v40  ;;  %v407_v52 = vsel %vm358_vm1, %v2119_v34, %v2123_v45  ;;  %1932 = vmatpush.msk.msra.mxu0 %vm2628_vm2, %v413_v47 }
  0xa6   : > { %768 = vmatpush.msra.mxu2 %v408_v51  ;;  %796 = vmatpush.msra.mxu3 %v407_v52 }
  0xa7   : > { %739 = vmatpush.msra.mxu1 %v410_v50  ;;  %1943 = vmatmul.msk.f32.vlgmr.msra.gmra.mxu2 %vm438_vm0, %v2639_v48 }
  0xa8   : > { %1939 = vmatmul.msk.f32.vlgmr.msra.gmra.mxu1 %vm438_vm0, %v2639_v48  ;;  %797 = vmatpush.msra.mxu3 %v406_v49  ;;  %v497_v18 = vpop.f32.mrf.mxu1 }
  0xa9   : > { %1947 = vmatmul.msk.f32.vlgmr.msra.gmra.mxu3 %vm438_vm0, %v2639_v48 }
  0xaa   : > { %v395_v55 = vpop.permute.xlu0 %394  ;;  %v468_v19 = vpop.f32.mrf.mxu0 }
  0xab   : > { %v2132_v56 = vpop.permute.xlu1 %2131  ;;  %v412_v57 = vsel %vm358_vm1, %v395_v55, %v367_v39  ;;  %v398_v1 = vsel %vm358_vm1, %v2139_v58, %v395_v55 }
  0xac   : > { %v2134_v60 = vunpack.i.h.bf16 %v2132_v56  ;;  %v2133_v61 = vunpack.i.l.bf16 %v2132_v56  ;;  %1934 = vmatpush.msk.msra.mxu0 %vm2628_vm2, %v412_v57 }
  0xad   : > { %1935 = vmatmul.msk.f32.vlgmr.msra.gmra.mxu0 %vm438_vm0, %v2639_v48 }
  0xae   : > { %v399_v63 = vsel %vm358_vm1, %v2134_v60, %v397_v30  ;;  %v401_v0 = vsel %vm358_vm1, %v2133_v61, %v2134_v60  ;;  %v526_v20 = vpop.f32.mrf.mxu2 }
  0xaf   : > { %912 = vmatpush.msrb.mxu3 %v399_v63  ;;  %1944 = vmatmul.msk.f32.gmra.mxu2 %vm438_vm0, %v431_v62 }
  0xb0   : > { %1940 = vmatmul.msk.f32.gmra.mxu1 %vm438_vm0, %v431_v62  ;;  %883 = vmatpush.msrb.mxu2 %v401_v0  ;;  %v555_v21 = vpop.f32.mrf.mxu3  ;;  %v500_v22 = vpop.f32.mrf.mxu1 }
  0xb1   : > { %1948 = vmatmul.msk.f32.gmra.mxu3 %vm438_vm0, %v431_v62 }
  0xb2   : > { %v2142_v4 = vpop.permute.xlu0 %2141  ;;  %913 = vmatpush.msrb.mxu3 %v398_v1  ;;  %884 = vmatpush.msrb.mxu2 %v400_v2  ;;  %v2744_v23 = vpop.f32.mrf.mxu0 }
  0xb3   : > { %v2144_v5 = vunpack.i.h.bf16 %v2142_v4  ;;  %v2143_v6 = vunpack.i.l.bf16 %v2142_v4  ;;  %v2789_v51 = vpop.permute.xlu1 %948  ;;  %v2793_v2 = vpop.permute.xlu2 %943 }
  0xb5   : > { %1936 = vmatmul.msk.f32.gmra.mxu0 %vm438_vm0, %v431_v62  ;;  %v405_v8 = vsel %vm358_vm1, %v2123_v45, %v2143_v6  ;;  %v403_v9 = vsel %vm358_vm1, %v2143_v6, %v2133_v61  ;;  %v402_v10 = vsel %vm358_vm1, %v2144_v5, %v2138_v59  ;;  %v404_v12 = vsel %vm358_vm1, %v2129_v38, %v2144_v5 }
  0xb6   : > { %825 = vmatpush.msrb.mxu0 %v405_v8  ;;  %854 = vmatpush.msrb.mxu1 %v403_v9  ;;  %v2746_v24 = vpop.f32.mrf.mxu2 }
  0xb7   : > { %1945 = vmatmul.msk.f32.gmra.mxu2 %vm438_vm0, %v432_v7 }
  0xb8   : > { %1941 = vmatmul.msk.f32.gmra.mxu1 %vm438_vm0, %v432_v7  ;;  %826 = vmatpush.msrb.mxu0 %v404_v12  ;;  %v2749_v25 = vpop.f32.mrf.mxu3  ;;  %v503_v26 = vpop.f32.mrf.mxu1 }
  0xb9   : > { %1949 = vmatmul.msk.f32.gmra.mxu3 %vm438_vm0, %v432_v7  ;;  %855 = vmatpush.msrb.mxu1 %v402_v10 }
  0xba   : > { %v474_v27 = vpop.f32.mrf.mxu0 }
  0xbb   : > { %v2791_v59 = vpop.permute.xlu1 %933 }
  0xbd   : > { %1937 = vmatmul.msk.f32.gmra.mxu0 %vm438_vm0, %v432_v7 }
  0xbe   : > { %v532_v28 = vpop.f32.mrf.mxu2 }
  0xbf   : > { %1946 = vmatmul.msk.f32.gmra.mxu2 %vm438_vm0, %v433_v13 }
  0xc0   : > { %1942 = vmatmul.msk.f32.gmra.mxu1 %vm438_vm0, %v433_v13  ;;  %v561_v29 = vpop.f32.mrf.mxu3  ;;  %v506_v30 = vpop.f32.mrf.mxu1 }
  0xc1   : > { %1950 = vmatmul.msk.f32.gmra.mxu3 %vm438_vm0, %v433_v13 }
  0xc2   : > { %v2751_v31 = vpop.f32.mrf.mxu0 }
  0xc5   : > { %1938 = vmatmul.msk.f32.gmra.mxu0 %vm438_vm0, %v433_v13 }
  0xc6   : > { %v2753_v32 = vpop.f32.mrf.mxu2 }
  0xc7   : > { %1959 = vmatmul.msk.f32.vlgmr.msrb.gmra.mxu2 %vm438_vm0, %v2639_v48 }
  0xc8   : > { %1955 = vmatmul.msk.f32.vlgmr.msrb.gmra.mxu1 %vm438_vm0, %v2639_v48  ;;  %v2755_v33 = vpop.f32.mrf.mxu3  ;;  %v2757_v34 = vpop.f32.mrf.mxu1 }
  0xc9   : > { %1963 = vmatmul.msk.f32.vlgmr.msrb.gmra.mxu3 %vm438_vm0, %v2639_v48 }
  0xca   : > { %v2759_v35 = vpop.f32.mrf.mxu0 }
  0xcd   : > { %1951 = vmatmul.msk.f32.vlgmr.msrb.gmra.mxu0 %vm438_vm0, %v2639_v48 }
  0xce   : > { %v2761_v36 = vpop.f32.mrf.mxu2 }
  0xcf   : > { %1960 = vmatmul.msk.f32.gmra.mxu2 %vm438_vm0, %v431_v62 }
  0xd0   : > { %1956 = vmatmul.msk.f32.gmra.mxu1 %vm438_vm0, %v431_v62  ;;  %v2763_v37 = vpop.f32.mrf.mxu3  ;;  %v2765_v38 = vpop.f32.mrf.mxu1 }
  0xd1   : > { %1964 = vmatmul.msk.f32.gmra.mxu3 %vm438_vm0, %v431_v62 }
  0xd2   : > { %v2767_v39 = vpop.f32.mrf.mxu0 }
  0xd5   : > { %1952 = vmatmul.msk.f32.gmra.mxu0 %vm438_vm0, %v431_v62 }
  0xd6   : > { %v2769_v40 = vpop.f32.mrf.mxu2 }
  0xd7   : > { %1961 = vmatmul.msk.f32.gmra.mxu2 %vm438_vm0, %v432_v7 }
  0xd8   : > { %1957 = vmatmul.msk.f32.gmra.mxu1 %vm438_vm0, %v432_v7  ;;  %v2771_v41 = vpop.f32.mrf.mxu3  ;;  %v2773_v42 = vpop.f32.mrf.mxu1 }
  0xd9   : > { %1965 = vmatmul.msk.f32.gmra.mxu3 %vm438_vm0, %v432_v7 }
  0xda   : > { %v2775_v43 = vpop.f32.mrf.mxu0 }
  0xdd   : > { %1953 = vmatmul.msk.f32.gmra.mxu0 %vm438_vm0, %v432_v7  ;;  %v2798_v7 = vpop.permute.xlu0 %938 }
  0xde   : > { %v2777_v44 = vpop.f32.mrf.mxu2 }
  0xdf   : > { %1962 = vmatmul.msk.f32.gmra.mxu2 %vm438_vm0, %v433_v13 }
  0xe0   : > { %1958 = vmatmul.msk.f32.gmra.mxu1 %vm438_vm0, %v433_v13  ;;  %v2779_v45 = vpop.f32.mrf.mxu3  ;;  %v2781_v46 = vpop.f32.mrf.mxu1 }
  0xe1   : > { %1966 = vmatmul.msk.f32.gmra.mxu3 %vm438_vm0, %v433_v13 }
  0xe2   : > { %v2783_v47 = vpop.f32.mrf.mxu0 }
  0xe5   : > { %1954 = vmatmul.msk.f32.gmra.mxu0 %vm438_vm0, %v433_v13 }
  0xe6   : > { %v2785_v48 = vpop.f32.mrf.mxu2 }
  0xe8   : > { %v2787_v49 = vpop.f32.mrf.mxu3 }
 0x125   : > { %v741_v50 = vpop.f32.mrf.mxu1 }
 0x126   : > { %v742_v58 = vadd.f32 %v741_v50, %v497_v18 }
 0x128   : > { %v952_v3 = vadd.f32 %v2791_v59, %v742_v58 }
 0x12a   : > { %v712_v52 = vpop.f32.mrf.mxu0  ;;  %v770_v53 = vpop.f32.mrf.mxu2  ;;  %2148 = vtanh.f32 %v952_v3 }
 0x12b   : > { %v713_v61 = vadd.f32 %v712_v52, %v468_v19  ;;  %v771_v63 = vadd.f32 %v770_v53, %v526_v20 }
 0x12c   : > { %v799_v54 = vpop.f32.mrf.mxu3 }
 0x12d   : > { %v744_v55 = vpop.f32.mrf.mxu1  ;;  %v800_v1 = vadd.f32 %v799_v54, %v555_v21  ;;  %v951_v6 = vadd.f32 %v2791_v59, %v713_v61  ;;  %v953_v8 = vadd.f32 %v2791_v59, %v771_v63 }
 0x12e   : > { %v745_v4 = vadd.f32 %v744_v55, %v500_v22 }
 0x12f   : > { %v954_v12 = vadd.f32 %v2791_v59, %v800_v1 }
 0x130   : > { %v960_v16 = vadd.f32 %v2798_v7, %v745_v4  ;;  %v2810_v54 = vpop.eup %2148 }
 0x132   : > { %v715_v56 = vpop.f32.mrf.mxu0  ;;  %v773_v57 = vpop.f32.mrf.mxu2 }
 0x133   : > { %v716_v21 = vadd.f32 %v715_v56, %v2744_v23  ;;  %v774_v22 = vadd.f32 %v773_v57, %v2746_v24 }
 0x134   : > { %v802_v60 = vpop.f32.mrf.mxu3 }
 0x135   : > { %v747_v62 = vpop.f32.mrf.mxu1  ;;  %v803_v52 = vadd.f32 %v802_v60, %v2749_v25  ;;  %v959_v23 = vadd.f32 %v2798_v7, %v716_v21  ;;  %v961_v24 = vadd.f32 %v2798_v7, %v774_v22 }
 0x136   : > { %v748_v0 = vadd.f32 %v747_v62, %v503_v26 }
 0x137   : > { %v962_v63 = vadd.f32 %v2798_v7, %v803_v52 }
 0x138   : > { %v968_v5 = vadd.f32 %v2793_v2, %v748_v0 }
 0x13a   : > { %v1968_v9 = vmul.f32 -1.442695, %v968_v5  ;;  %v718_v10 = vpop.f32.mrf.mxu0  ;;  %v776_v11 = vpop.f32.mrf.mxu2 }
 0x13b   : > { %v719_v13 = vadd.f32 %v718_v10, %v474_v27  ;;  %v777_v14 = vadd.f32 %v776_v11, %v532_v28 }
 0x13c   : > { %2150 = vpow2.f32 %v1968_v9  ;;  %v805_v15 = vpop.f32.mrf.mxu3 }
 0x13d   : > { %2152 = vtanh.f32 %v951_v6  ;;  %v967_v17 = vadd.f32 %v2793_v2, %v719_v13  ;;  %v969_v18 = vadd.f32 %v2793_v2, %v777_v14  ;;  %v750_v19 = vpop.f32.mrf.mxu1  ;;  %v806_v20 = vadd.f32 %v805_v15, %v561_v29 }
 0x13e   : > { %2154 = vtanh.f32 %v953_v8  ;;  %v751_v26 = vadd.f32 %v750_v19, %v506_v30 }
 0x13f   : > { %2156 = vtanh.f32 %v954_v12  ;;  %v1967_v27 = vmul.f32 -1.442695, %v967_v17  ;;  %v1969_v28 = vmul.f32 -1.442695, %v969_v18  ;;  %v970_v50 = vadd.f32 %v2793_v2, %v806_v20 }
 0x140   : > { %v976_v53 = vadd.f32 %v2789_v51, %v751_v26  ;;  %2158 = vtanh.f32 %v960_v16 }
 0x141   : > { %2160 = vpow2.f32 %v1967_v27  ;;  %v1970_v29 = vmul.f32 -1.442695, %v970_v50 }
 0x142   : > { %v2151_v55 = vpop.eup %2150  ;;  %2162 = vpow2.f32 %v1969_v28  ;;  %v1976_v30 = vmul.f32 -1.442695, %v976_v53  ;;  %v721_v56 = vpop.f32.mrf.mxu0 }
 0x143   : > { %v779_v57 = vpop.f32.mrf.mxu2  ;;  %v2814_v58 = vpop.eup %2152  ;;  %2164 = vpow2.f32 %v1970_v29  ;;  %v722_v25 = vadd.f32 %v721_v56, %v2751_v31  ;;  %v2818_v61 = vadd.f32 1.0, %v2151_v55 }
 0x144   : > { %v780_v60 = vadd.f32 %v779_v57, %v2753_v32  ;;  %v2820_v62 = vpop.eup %2154  ;;  %2166 = vpow2.f32 %v1976_v30  ;;  %v808_v0 = vpop.f32.mrf.mxu3 }
 0x145   : > { %v2823_v1 = vpop.eup %2156  ;;  %v975_v3 = vadd.f32 %v2789_v51, %v722_v25  ;;  %v809_v4 = vadd.f32 %v808_v0, %v2755_v33  ;;  %v857_v5 = vpop.f32.mrf.mxu1  ;;  %2168 = vrcp.f32 %v2818_v61  ;;  %v1089_v14 = vand.u32 2147483648, %v2818_v61 }
 0x146   : > { %v2828_v31 = vpop.eup %2158  ;;  %2170 = vtanh.f32 %v959_v23  ;;  %v977_v32 = vadd.f32 %v2789_v51, %v780_v60  ;;  %v858_v12 = vadd.f32 %v857_v5, %v2757_v34  ;;  %v1087_v53 = vand.u32 2147483647, %v2818_v61 }
 0x147   : > { %v2161_v6 = vpop.eup %2160  ;;  %2172 = vtanh.f32 %v961_v24  ;;  %v1975_v8 = vmul.f32 -1.442695, %v975_v3  ;;  %v978_v9 = vadd.f32 %v2789_v51, %v809_v4  ;;  %vm1083_vm3 = vweird.f32 %v2818_v61 }
 0x148   : > { %v2163_v10 = vpop.eup %2162  ;;  %2174 = vtanh.f32 %v962_v63  ;;  %v2832_v11 = vadd.f32 1.0, %v2161_v6  ;;  %v1977_v17 = vmul.f32 -1.442695, %v977_v32  ;;  %v956_v28 = vadd.f32 %v2791_v59, %v858_v12 }
 0x149   : > { %v2165_v33 = vpop.eup %2164  ;;  %v2835_v13 = vadd.f32 1.0, %v2163_v10  ;;  %2176 = vpow2.f32 %v1975_v8  ;;  %v1978_v18 = vmul.f32 -1.442695, %v978_v9  ;;  %v1090_v30 = vor.u32 1.1754944e-38, %v1089_v14 }
 0x14a   : > { %v2167_v15 = vpop.eup %2166  ;;  %2178 = vrcp.f32 %v2832_v11  ;;  %v2839_v16 = vadd.f32 1.0, %v2165_v33  ;;  %v828_v19 = vpop.f32.mrf.mxu0  ;;  %vm2872_vm4 = vcmp.eq.f32.partialorder %v1087_v53, 8.507059e+37  ;;  %v1072_v6 = vand.u32 2147483647, %v2832_v11 }
 0x14b   : > { %v886_v20 = vpop.f32.mrf.mxu2  ;;  %v2841_v21 = vpop.eup %2168  ;;  %2180 = vrcp.f32 %v2835_v13  ;;  %v2844_v34 = vadd.f32 1.0, %v2167_v15  ;;  %v829_v22 = vadd.f32 %v828_v19, %v2759_v35  ;;  %vm1068_vm2 = vweird.f32 %v2832_v11 }
 0x14c   : > { %v887_v26 = vadd.f32 %v886_v20, %v2761_v36  ;;  %v2848_v27 = vpop.eup %2170  ;;  %2182 = vrcp.f32 %v2839_v16  ;;  %v915_v50 = vpop.f32.mrf.mxu3  ;;  %v1079_v52 = vmul.f32 %v2841_v21, %v2818_v61  ;;  %vm1084_vm6 = vweird.f32 %v2841_v21 }
 0x14d   : > { %v2855_v29 = vpop.eup %2172  ;;  %2184 = vrcp.f32 %v2844_v34  ;;  %v955_v35 = vadd.f32 %v2791_v59, %v829_v22  ;;  %v860_v55 = vpop.f32.mrf.mxu1  ;;  %v916_v36 = vadd.f32 %v915_v50, %v2763_v37  ;;  %v1209_v25 = vand.u32 2147483648, %v2844_v34  ;;  %vm1085_vm8 = vmor %vm1083_vm3, %vm1084_vm6 }
 0x14e   : > { %v2860_v23 = vpop.eup %2174  ;;  %2186 = vpow2.f32 %v1977_v17  ;;  %v861_v24 = vadd.f32 %v860_v55, %v2765_v38  ;;  %v957_v57 = vadd.f32 %v2791_v59, %v887_v26  ;;  %v1080_v60 = vsub.f32 1.0, %v1079_v52 }
 0x14f   : > { %v2177_v56 = vpop.eup %2176  ;;  %2188 = vpow2.f32 %v1978_v18  ;;  %v1207_v3 = vand.u32 2147483647, %v2844_v34  ;;  %v958_v5 = vadd.f32 %v2791_v59, %v916_v36  ;;  %vm1203_vm5 = vweird.f32 %v2844_v34 }
 0x150   : > { %v2866_v63 = vpop.eup %2178  ;;  %v2868_v0 = vadd.f32 1.0, %v2177_v56  ;;  %2190 = vtanh.f32 %v956_v28  ;;  %v964_v37 = vadd.f32 %v2798_v7, %v861_v24  ;;  %v1081_v32 = vmul.f32 %v2841_v21, %v1080_v60 }
 0x151   : > { %v2876_v4 = vpop.eup %2180  ;;  %2192 = vtanh.f32 %v955_v35  ;;  %v2885_v12 = vor.u32 1.1754944e-38, %v1209_v25  ;;  %vm2895_vm7 = vcmp.eq.f32.partialorder %v1207_v3, 8.507059e+37  ;;  %v2902_v26 = vmul.f32 %v2866_v63, %v2832_v11 }
 0x152   : > { %v2881_v8 = vpop.eup %2182  ;;  %2194 = vrcp.f32 %v2868_v0  ;;  %v831_v9 = vpop.f32.mrf.mxu0  ;;  %v1082_v15 = vadd.f32 %v2841_v21, %v1081_v32  ;;  %v1194_v22 = vand.u32 2147483648, %v2868_v0  ;;  %v1192_v25 = vand.u32 2147483647, %v2868_v0 }
 0x153   : > { %v889_v10 = vpop.f32.mrf.mxu2  ;;  %v2888_v33 = vpop.eup %2184  ;;  %2196 = vtanh.f32 %v957_v57  ;;  %v832_v59 = vadd.f32 %v831_v9, %v2767_v39  ;;  %vm1188_vm10 = vweird.f32 %v2868_v0  ;;  %vm1069_vm6 = vweird.f32 %v2866_v63 }
 0x154   : > { %v890_v14 = vadd.f32 %v889_v10, %v2769_v40  ;;  %v2187_v17 = vpop.eup %2186  ;;  %v1199_v18 = vmul.f32 %v2888_v33, %v2844_v34  ;;  %2198 = vtanh.f32 %v964_v37  ;;  %v918_v19 = vpop.f32.mrf.mxu3  ;;  %vm1204_vm9 = vweird.f32 %v2888_v33 }
 0x155   : > { %v2189_v39 = vpop.eup %2188  ;;  %v2904_v40 = vadd.f32 1.0, %v2187_v17  ;;  %2200 = vtanh.f32 %v958_v5  ;;  %v963_v28 = vadd.f32 %v2798_v7, %v832_v59  ;;  %v863_v52 = vpop.f32.mrf.mxu1  ;;  %v919_v24 = vadd.f32 %v918_v19, %v2771_v41  ;;  %vm1205_vm11 = vmor %vm1203_vm5, %vm1204_vm9 }
 0x156   : > { %v965_v50 = vadd.f32 %v2798_v7, %v890_v14  ;;  %v2908_v53 = vpop.eup %2190  ;;  %v1200_v35 = vsub.f32 1.0, %v1199_v18  ;;  %v2910_v55 = vadd.f32 1.0, %v2189_v39  ;;  %v864_v36 = vadd.f32 %v863_v52, %v2773_v42 }
 0x157   : > { %v2918_v56 = vpop.eup %2192  ;;  %2202 = vrcp.f32 %v2904_v40  ;;  %v1086_v57 = vsel %vm1085_vm8, %v2841_v21, %v1082_v15  ;;  %v966_v42 = vadd.f32 %v2798_v7, %v919_v24  ;;  %v1195_v59 = vor.u32 1.1754944e-38, %v1194_v22 }
 0x158   : > { %v2924_v60 = vpop.eup %2194  ;;  %2204 = vrcp.f32 %v2910_v55  ;;  %v972_v41 = vadd.f32 %v2793_v2, %v864_v36  ;;  %v1201_v61 = vmul.f32 %v2888_v33, %v1200_v35  ;;  %v1091_v21 = vsel %vm2872_vm4, %v1090_v30, %v1086_v57 }
 0x159   : > { %v2930_v37 = vpop.eup %2196  ;;  %v1184_v3 = vmul.f32 %v2924_v60, %v2868_v0  ;;  %2206 = vtanh.f32 %v963_v28  ;;  %vm2948_vm12 = vcmp.eq.f32.partialorder %v1192_v25, 8.507059e+37  ;;  %v1304_v22 = vmul.f32 %v2810_v54, %v1091_v21 }
 0x15a   : > { %v2937_v5 = vpop.eup %2198  ;;  %2208 = vtanh.f32 %v965_v50  ;;  %v1972_v32 = vmul.f32 -1.442695, %v972_v41  ;;  %v834_v9 = vpop.f32.mrf.mxu0  ;;  %v1202_v7 = vadd.f32 %v2888_v33, %v1201_v61  ;;  %vm1189_vm13 = vweird.f32 %v2924_v60 }
 0x15b   : > { %v892_v10 = vpop.f32.mrf.mxu2  ;;  %v2940_v14 = vpop.eup %2200  ;;  %v1185_v15 = vsub.f32 1.0, %v1184_v3  ;;  %2210 = vtanh.f32 %v966_v42  ;;  %v835_v17 = vadd.f32 %v834_v9, %v2775_v43  ;;  %vm1218_vm14 = vweird.f32 %v2904_v40  ;;  %vm2995_vm15 = vmor %vm1188_vm10, %vm1189_vm13 }
 0x15c   : > { %v893_v38 = vadd.f32 %v892_v10, %v2777_v44  ;;  %2212 = vpow2.f32 %v1972_v32  ;;  %v921_v18 = vpop.f32.mrf.mxu3  ;;  %v1206_v19 = vsel %vm1205_vm11, %v2888_v33, %v1202_v7  ;;  %v1222_v20 = vand.u32 2147483647, %v2904_v40 }
 0x15d   : > { %v2956_v43 = vpop.eup %2202  ;;  %v971_v44 = vadd.f32 %v2793_v2, %v835_v17  ;;  %v866_v39 = vpop.f32.mrf.mxu1  ;;  %v922_v28 = vadd.f32 %v921_v18, %v2779_v45  ;;  %v1211_v50 = vsel %vm2895_vm7, %v2885_v12, %v1206_v19  ;;  %v1186_v36 = vmul.f32 %v2924_v60, %v1185_v15  ;;  %vm1070_vm7 = vmor %vm1068_vm2, %vm1069_vm6 }
 0x15e   : > { %v973_v34 = vadd.f32 %v2793_v2, %v893_v38  ;;  %v2964_v33 = vpop.eup %2204  ;;  %v1214_v54 = vmul.f32 %v2956_v43, %v2904_v40  ;;  %v867_v52 = vadd.f32 %v866_v39, %v2781_v46  ;;  %v1312_v35 = vmul.f32 %v2828_v31, %v1211_v50  ;;  %v2981_v46 = vld [vmem:[%s3544_s4] sm:$0xff] }
 0x15f   : > { %v2971_v24 = vpop.eup %2206  ;;  %v1971_v57 = vmul.f32 -1.442695, %v971_v44  ;;  %v974_v45 = vadd.f32 %v2793_v2, %v922_v28  ;;  %v1187_v31 = vadd.f32 %v2924_v60, %v1186_v36  ;;  %v1224_v61 = vand.u32 2147483648, %v2904_v40 }
 0x160   : > { %v1973_v25 = vmul.f32 -1.442695, %v973_v34  ;;  %v2975_v12 = vpop.eup %2208  ;;  %v1215_v41 = vsub.f32 1.0, %v1214_v54  ;;  %v980_v42 = vadd.f32 %v2789_v51, %v867_v52  ;;  %1428 = vmatpush.msra.mxu1 %v1312_v35  ;;  %v2989_v2 = vmul.f32 %v2964_v33, %v2910_v55 }
 0x161   : > { %v2985_v3 = vpop.eup %2210  ;;  %2214 = vpow2.f32 %v1971_v57  ;;  %v1974_v21 = vmul.f32 -1.442695, %v974_v45  ;;  %vm1219_vm1 = vweird.f32 %v2956_v43  ;;  %v1191_v17 = vsel %vm2995_vm15, %v2924_v60, %v1187_v31 }
 0x162   : > { %v2213_v9 = vpop.eup %2212  ;;  %2216 = vpow2.f32 %v1973_v25  ;;  %v1980_v10 = vmul.f32 -1.442695, %v980_v42  ;;  %1429 = vmatpush.msra.mxu1 %v1304_v22  ;;  %v837_v7 = vpop.f32.mrf.mxu0  ;;  %v1216_v38 = vmul.f32 %v2956_v43, %v1215_v41  ;;  %v1196_v44 = vsel %vm2948_vm12, %v1195_v59, %v1191_v17  ;;  %vm1220_vm5 = vmor %vm1218_vm14, %vm1219_vm1 }
 0x163   : > { %v895_v15 = vpop.f32.mrf.mxu2  ;;  %v3005_v0 = vadd.f32 1.0, %v2213_v9  ;;  %2218 = vpow2.f32 %v1974_v21  ;;  %v838_v18 = vadd.f32 %v837_v7, %v2783_v47  ;;  %1989 = vmatmul.msk.f32.vlgmr.msra.gmra.mxu1 %vm438_vm0, %v2981_v46  ;;  %vm1223_vm3 = vcmp.eq.f32.partialorder %v1222_v20, 8.507059e+37 }
 0x164   : > { %v896_v19 = vadd.f32 %v895_v15, %v2785_v48  ;;  %2220 = vpow2.f32 %v1980_v10  ;;  %v924_v22 = vpop.f32.mrf.mxu3  ;;  %v1217_v60 = vadd.f32 %v2956_v43, %v1216_v38  ;;  %vm3016_vm4 = vcmp.eq.f32.partialorder %v1072_v6, 8.507059e+37 }
 0x165   : > { %2222 = vrcp.f32 %v3005_v0  ;;  %v979_v47 = vadd.f32 %v2789_v51, %v838_v18  ;;  %v925_v48 = vadd.f32 %v924_v22, %v2787_v49  ;;  %v1225_v59 = vor.u32 1.1754944e-38, %v1224_v61 }
 0x166   : > { %v981_v30 = vadd.f32 %v2789_v51, %v896_v19  ;;  %v1311_v39 = vmul.f32 %v2848_v27, %v1196_v44  ;;  %v1221_v6 = vsel %vm1220_vm5, %v2956_v43, %v1217_v60  ;;  %v1065_v28 = vsub.f32 1.0, %v2902_v26  ;;  %v3041_v26 = vld [vmem:[%s3544_s4 + $0x8] sm:$0xff]  ;;  %v3088_v60 = vld [vmem:[%s3544_s4 + $0x10] sm:$0xff] }
 0x167   : > { %v2215_v50 = vpop.eup %2214  ;;  %v1979_v54 = vmul.f32 -1.442695, %v979_v47  ;;  %v982_v52 = vadd.f32 %v2789_v51, %v925_v48  ;;  %v1226_v35 = vsel %vm1223_vm3, %v1225_v59, %v1221_v6  ;;  %v1074_v27 = vand.u32 2147483648, %v2832_v11 }
 0x168   : > { %v2217_v49 = vpop.eup %2216  ;;  %v3033_v36 = vadd.f32 1.0, %v2215_v50  ;;  %1393 = vmatpush.msra.mxu0 %v1311_v39  ;;  %v1313_v40 = vmul.f32 %v2855_v29, %v1226_v35  ;;  %v1066_v57 = vmul.f32 %v2866_v63, %v1065_v28  ;;  %v1230_v51 = vsub.f32 1.0, %v2989_v2 }
 0x169   : > { %v2219_v43 = vpop.eup %2218  ;;  %v3044_v25 = vadd.f32 1.0, %v2217_v49  ;;  %2224 = vpow2.f32 %v1979_v54  ;;  %v1094_v45 = vmul.f32 %v2876_v4, %v2835_v13  ;;  %v1981_v29 = vmul.f32 -1.442695, %v981_v30 }
 0x16a   : > { %v2221_v20 = vpop.eup %2220  ;;  %2226 = vrcp.f32 %v3033_v36  ;;  %v1982_v41 = vmul.f32 -1.442695, %v982_v52  ;;  %1463 = vmatpush.msra.mxu2 %v1313_v40  ;;  %v1067_v42 = vadd.f32 %v2866_v63, %v1066_v57  ;;  %v3054_v21 = vadd.f32 1.0, %v2219_v43 }
 0x16b   : > { %v3050_v31 = vpop.eup %2222  ;;  %v3052_v61 = vadd.f32 1.0, %v2221_v20  ;;  %v1075_v2 = vor.u32 1.1754944e-38, %v1074_v27  ;;  %v1095_v32 = vsub.f32 1.0, %v1094_v45  ;;  %1990 = vmatmul.msk.f32.gmra.mxu1 %vm438_vm0, %v3041_v26  ;;  %2228 = vrcp.f32 %v3044_v25 }
 0x16c   : > { %v1071_v9 = vsel %vm1070_vm7, %v2866_v63, %v1067_v42  ;;  %vm1099_vm8 = vweird.f32 %v2876_v4  ;;  %v1102_v10 = vand.u32 2147483647, %v2835_v13  ;;  %v1104_v15 = vand.u32 2147483648, %v2835_v13 }
 0x16d   : > { %2230 = vrcp.f32 %v3052_v61  ;;  %v1076_v7 = vsel %vm3016_vm4, %v1075_v2, %v1071_v9  ;;  %v1096_v11 = vmul.f32 %v2876_v4, %v1095_v32  ;;  %vm1098_vm9 = vweird.f32 %v2835_v13 }
 0x16e   : > { %2232 = vpow2.f32 %v1981_v29  ;;  %v1303_v17 = vmul.f32 %v2814_v58, %v1076_v7  ;;  %v1231_v63 = vmul.f32 %v2964_v33, %v1230_v51  ;;  %v1105_v19 = vor.u32 1.1754944e-38, %v1104_v15  ;;  %vm1100_vm11 = vmor %vm1098_vm9, %vm1099_vm8 }
 0x16f   : > { %v2225_v38 = vpop.eup %2224  ;;  %2234 = vpow2.f32 %v1982_v41  ;;  %v1097_v18 = vadd.f32 %v2876_v4, %v1096_v11  ;;  %vm1233_vm10 = vweird.f32 %v2910_v55  ;;  %vm1234_vm12 = vweird.f32 %v2964_v33 }
 0x170   : > { %v3076_v22 = vpop.eup %2226  ;;  %v3078_v44 = vadd.f32 1.0, %v2225_v38  ;;  %1394 = vmatpush.msra.mxu0 %v1303_v17  ;;  %v1232_v58 = vadd.f32 %v2964_v33, %v1231_v63  ;;  %v1237_v13 = vand.u32 2147483647, %v2910_v55  ;;  %vm1103_vm13 = vcmp.eq.f32.partialorder %v1102_v10, 8.507059e+37  ;;  %vm3091_vm14 = vmor %vm1233_vm10, %vm1234_vm12 }
 0x171   : > { %v1101_v34 = vsel %vm1100_vm11, %v2876_v4, %v1097_v18  ;;  %v1239_v48 = vand.u32 2147483648, %v2910_v55  ;;  %1983 = vmatmul.msk.f32.vlgmr.msra.gmra.mxu0 %vm438_vm0, %v2981_v46  ;;  %v1109_v59 = vmul.f32 %v2881_v8, %v2839_v16  ;;  %v3100_v30 = vpop.eup %2228  ;;  %vm1113_vm15 = vweird.f32 %v2839_v16 }
 0x172   : > { %2236 = vrcp.f32 %v3078_v44  ;;  %v1106_v39 = vsel %vm1103_vm13, %v1105_v19, %v1101_v34  ;;  %v1236_v4 = vsel %vm3091_vm14, %v2964_v33, %v1232_v58  ;;  %vm1238_vm1 = vcmp.eq.f32.partialorder %v1237_v13, 8.507059e+37 }
 0x173   : > { %v2231_v6 = vpop.eup %2230  ;;  %v1305_v55 = vmul.f32 %v2820_v62, %v1106_v39  ;;  %v1240_v28 = vor.u32 1.1754944e-38, %v1239_v48  ;;  %v1110_v50 = vsub.f32 1.0, %v1109_v59  ;;  %1991 = vmatmul.msk.f32.gmra.mxu1 %vm438_vm0, %v3088_v60  ;;  %vm1114_vm2 = vweird.f32 %v2881_v8 }
 0x174   : > { %v2233_v54 = vpop.eup %2232  ;;  %v1259_v52 = vmul.f32 %v2231_v6, %v3052_v61  ;;  %v1117_v35 = vand.u32 2147483647, %v2839_v16  ;;  %v1119_v33 = vand.u32 2147483648, %v2839_v16  ;;  %vm1263_vm3 = vweird.f32 %v3052_v61  ;;  %vm1115_vm5 = vmor %vm1113_vm15, %vm1114_vm2 }
 0x175   : > { %v2235_v49 = vpop.eup %2234  ;;  %v3114_v40 = vadd.f32 1.0, %v2233_v54  ;;  %1464 = vmatpush.msra.mxu2 %v1305_v55  ;;  %v1241_v62 = vsel %vm1238_vm1, %v1240_v28, %v1236_v4  ;;  %v1111_v57 = vmul.f32 %v2881_v8, %v1110_v50  ;;  %vm1264_vm4 = vweird.f32 %v2231_v6  ;;  %v3189_v54 = vld [vmem:[%s3544_s4 + $0x20] sm:$0xff] }
 0x176   : > { %v1260_v27 = vsub.f32 1.0, %v1259_v52  ;;  %v3118_v43 = vadd.f32 1.0, %v2235_v49  ;;  %v1314_v51 = vmul.f32 %v2860_v23, %v1241_v62  ;;  %1995 = vmatmul.msk.f32.vlgmr.msra.gmra.mxu2 %vm438_vm0, %v2981_v46  ;;  %v1120_v20 = vor.u32 1.1754944e-38, %v1119_v33  ;;  %v3136_v23 = vld [vmem:[%s3544_s4 + $0x18] sm:$0xff]  ;;  %vm1265_vm9 = vmor %vm1263_vm3, %vm1264_vm4 }
 0x177   : > { %2238 = vrcp.f32 %v3114_v40  ;;  %v1112_v45 = vadd.f32 %v2881_v8, %v1111_v57  ;;  %v1267_v29 = vand.u32 2147483647, %v3052_v61  ;;  %v1269_v2 = vand.u32 2147483648, %v3052_v61 }
 0x178   : > { %v3126_v41 = vpop.eup %2236  ;;  %2240 = vrcp.f32 %v3118_v43  ;;  %1498 = vmatpush.msra.mxu3 %v1314_v51  ;;  %v1261_v42 = vmul.f32 %v2231_v6, %v1260_v27  ;;  %v1139_v32 = vmul.f32 %v3050_v31, %v3005_v0  ;;  %vm1118_vm6 = vcmp.eq.f32.partialorder %v1117_v35, 8.507059e+37 }
 0x179   : > { %v1244_v9 = vmul.f32 %v3126_v41, %v3078_v44  ;;  %v1116_v10 = vsel %vm1115_vm5, %v2881_v8, %v1112_v45  ;;  %1984 = vmatmul.msk.f32.gmra.mxu0 %vm438_vm0, %v3041_v26  ;;  %vm3146_vm7 = vcmp.eq.f32.partialorder %v1267_v29, 8.507059e+37  ;;  %vm1143_vm8 = vweird.f32 %v3005_v0 }
 0x17a   : > { %v1121_v7 = vsel %vm1118_vm6, %v1120_v20, %v1116_v10  ;;  %v1262_v11 = vadd.f32 %v2231_v6, %v1261_v42  ;;  %v1140_v15 = vsub.f32 1.0, %v1139_v32  ;;  %v1270_v8 = vor.u32 1.1754944e-38, %v1269_v2 }
 0x17b   : > { %v1245_v17 = vsub.f32 1.0, %v1244_v9  ;;  %v1306_v63 = vmul.f32 %v2823_v1, %v1121_v7  ;;  %1992 = vmatmul.msk.f32.gmra.mxu1 %vm438_vm0, %v3136_v23  ;;  %vm1144_vm10 = vweird.f32 %v3050_v31  ;;  %v1147_v19 = vand.u32 2147483647, %v3005_v0 }
 0x17c   : > { %v1266_v38 = vsel %vm1265_vm9, %v2231_v6, %v1262_v11  ;;  %v1141_v18 = vmul.f32 %v3050_v31, %v1140_v15  ;;  %v1149_v58 = vand.u32 2147483648, %v3005_v0  ;;  %vm1248_vm11 = vweird.f32 %v3078_v44  ;;  %vm1145_vm13 = vmor %vm1143_vm8, %vm1144_vm10 }
 0x17d   : > { %v2239_v13 = vpop.eup %2238  ;;  %1499 = vmatpush.msra.mxu3 %v1306_v63  ;;  %v1271_v1 = vsel %vm3146_vm7, %v1270_v8, %v1266_v38  ;;  %v1246_v34 = vmul.f32 %v3126_v41, %v1245_v17  ;;  %vm1249_vm12 = vweird.f32 %v3126_v41  ;;  %v1252_v55 = vand.u32 2147483647, %v3078_v44  ;;  %v3240_v17 = vld [vmem:[%s3544_s4 + $0x28] sm:$0xff] }
 0x17e   : > { %v3166_v61 = vpop.eup %2240  ;;  %v1274_v47 = vmul.f32 %v2239_v13, %v3114_v40  ;;  %2001 = vmatmul.msk.f32.vlgmr.msra.gmra.mxu3 %vm438_vm0, %v2981_v46  ;;  %1996 = vmatmul.msk.f32.gmra.mxu2 %vm438_vm0, %v3041_v26  ;;  %v1316_v48 = vmul.f32 %v2937_v5, %v1271_v1  ;;  %v1142_v59 = vadd.f32 %v3050_v31, %v1141_v18  ;;  %v1150_v39 = vor.u32 1.1754944e-38, %v1149_v58  ;;  %vm3195_vm15 = vmor %vm1248_vm11, %vm1249_vm12 }
 0x17f   : > { %v1289_v4 = vmul.f32 %v3166_v61, %v3118_v43  ;;  %v1247_v6 = vadd.f32 %v3126_v41, %v1246_v34  ;;  %v1254_v28 = vand.u32 2147483648, %v3078_v44  ;;  %2242 = vrcp.f32 %v3054_v21 }
 0x180   : > { %v1275_v5 = vsub.f32 1.0, %v1274_v47  ;;  %1568 = vmatpush.msrb.mxu1 %v1316_v48  ;;  %v1146_v50 = vsel %vm1145_vm13, %v3050_v31, %v1142_v59  ;;  %vm1148_vm14 = vcmp.eq.f32.partialorder %v1147_v19, 8.507059e+37  ;;  %vm1278_vm1 = vweird.f32 %v3114_v40 }
 0x181   : > { %1985 = vmatmul.msk.f32.gmra.mxu0 %vm438_vm0, %v3088_v60  ;;  %v1151_v52 = vsel %vm1148_vm14, %v1150_v39, %v1146_v50  ;;  %v1251_v31 = vsel %vm3195_vm15, %v3126_v41, %v1247_v6  ;;  %vm1279_vm2 = vweird.f32 %v2239_v13  ;;  %v1255_v33 = vor.u32 1.1754944e-38, %v1254_v28 }
 0x182   : > { %v1308_v35 = vmul.f32 %v2908_v53, %v1151_v52  ;;  %v1276_v49 = vmul.f32 %v2239_v13, %v1275_v5  ;;  %v1282_v44 = vand.u32 2147483647, %v3114_v40  ;;  %v1290_v62 = vsub.f32 1.0, %v1289_v4  ;;  %vm1280_vm5 = vmor %vm1278_vm1, %vm1279_vm2  ;;  %v2245_v52 = vld [vmem:[%s2532_s11 + $0x48] sm:$0xff] }
 0x183   : > { %1993 = vmatmul.msk.f32.gmra.mxu1 %vm438_vm0, %v3189_v54  ;;  %vm1253_vm3 = vcmp.eq.f32.partialorder %v1252_v55, 8.507059e+37  ;;  %v1284_v57 = vand.u32 2147483648, %v3114_v40  ;;  %v1124_v27 = vmul.f32 %v3076_v22, %v3033_v36  ;;  %vm1128_vm4 = vweird.f32 %v3033_v36 }
 0x184   : > { %1569 = vmatpush.msrb.mxu1 %v1308_v35  ;;  %v1256_v51 = vsel %vm1253_vm3, %v1255_v33, %v1251_v31  ;;  %v1277_v45 = vadd.f32 %v2239_v13, %v1276_v49  ;;  %v1132_v53 = vand.u32 2147483647, %v3033_v36  ;;  %v1134_v42 = vand.u32 2147483648, %v3033_v36 }
 0x185   : > { %v1315_v20 = vmul.f32 %v2971_v24, %v1256_v51  ;;  %v1285_v29 = vor.u32 1.1754944e-38, %v1284_v57  ;;  %v1125_v41 = vsub.f32 1.0, %v1124_v27  ;;  %v3219_v2 = vpop.eup %2242  ;;  %vm1283_vm6 = vcmp.eq.f32.partialorder %v1282_v44, 8.507059e+37 }
 0x186   : > { %2002 = vmatmul.msk.f32.gmra.mxu3 %vm438_vm0, %v3041_v26  ;;  %1997 = vmatmul.msk.f32.gmra.mxu2 %vm438_vm0, %v3088_v60  ;;  %v1281_v32 = vsel %vm1280_vm5, %v2239_v13, %v1277_v45  ;;  %vm1129_vm7 = vweird.f32 %v3076_v22  ;;  %v1154_v24 = vmul.f32 %v3100_v30, %v3044_v25  ;;  %vm3229_vm8 = vcmp.eq.f32.partialorder %v1132_v53, 8.507059e+37  ;;  %v3373_v53 = vpop.permute.xlu0 %1348 }
 0x187   : > { %1533 = vmatpush.msrb.mxu0 %v1315_v20  ;;  %v1286_v40 = vsel %vm1283_vm6, %v1285_v29, %v1281_v32  ;;  %v1126_v9 = vmul.f32 %v3076_v22, %v1125_v41  ;;  %vm1158_vm9 = vweird.f32 %v3044_v25  ;;  %v1162_v11 = vand.u32 2147483647, %v3044_v25  ;;  %vm1130_vm11 = vmor %vm1128_vm4, %vm1129_vm7  ;;  %v2247_v41 = vld [vmem:[%s2532_s11 + $0x40] sm:$0xff] }
 0x188   : > { %v1317_v16 = vmul.f32 %v2975_v12, %v1286_v40  ;;  %v1155_v7 = vsub.f32 1.0, %v1154_v24  ;;  %v1164_v15 = vand.u32 2147483648, %v3044_v25  ;;  %v1135_v8 = vor.u32 1.1754944e-38, %v1134_v42  ;;  %v2248_v24 = vld [vmem:[%s2532_s11 + $0x10] sm:$0xff] }
 0x189   : > { %1986 = vmatmul.msk.f32.gmra.mxu0 %vm438_vm0, %v3136_v23  ;;  %v1127_v63 = vadd.f32 %v3076_v22, %v1126_v9  ;;  %v1291_v38 = vmul.f32 %v3166_v61, %v1290_v62  ;;  %vm1294_vm10 = vweird.f32 %v3166_v61  ;;  %vm1159_vm12 = vweird.f32 %v3100_v30  ;;  %v2246_v62 = vld [vmem:[%s2532_s11] sm:$0xff] }
 0x18a   : > { %1603 = vmatpush.msrb.mxu2 %v1317_v16  ;;  %v1156_v12 = vmul.f32 %v3100_v30, %v1155_v7  ;;  %vm1293_vm13 = vweird.f32 %v3118_v43  ;;  %v1297_v18 = vand.u32 2147483647, %v3118_v43  ;;  %v1299_v13 = vand.u32 2147483648, %v3118_v43  ;;  %vm1160_vm1 = vmor %vm1158_vm9, %vm1159_vm12 }
 0x18b   : > { %v1131_v19 = vsel %vm1130_vm11, %v3076_v22, %v1127_v63  ;;  %v1292_v58 = vadd.f32 %v3166_v61, %v1291_v38  ;;  %v1169_v1 = vmul.f32 %v3219_v2, %v3054_v21  ;;  %1994 = vmatmul.msk.f32.gmra.mxu1 %vm438_vm0, %v3240_v17  ;;  %vm1163_vm14 = vcmp.eq.f32.partialorder %v1162_v11, 8.507059e+37  ;;  %vm1295_vm15 = vmor %vm1293_vm13, %vm1294_vm10  ;;  %v2249_v38 = vld [vmem:[%s2532_s11 + $0x18] sm:$0xff] }
 0x18c   : > { %v1136_v36 = vsel %vm3229_vm8, %v1135_v8, %v1131_v19  ;;  %v1157_v34 = vadd.f32 %v3100_v30, %v1156_v12  ;;  %v1165_v47 = vor.u32 1.1754944e-38, %v1164_v15  ;;  %v1300_v48 = vor.u32 1.1754944e-38, %v1299_v13 }
 0x18d   : > { %v1307_v22 = vmul.f32 %v2918_v56, %v1136_v36  ;;  %v1296_v43 = vsel %vm1295_vm15, %v3166_v61, %v1292_v58  ;;  %v1170_v59 = vsub.f32 1.0, %v1169_v1  ;;  %vm1298_vm2 = vcmp.eq.f32.partialorder %v1297_v18, 8.507059e+37  ;;  %v2250_v18 = vld [vmem:[%s2532_s11 + $0x50] sm:$0xff] }
 0x18e   : > { %2003 = vmatmul.msk.f32.gmra.mxu3 %vm438_vm0, %v3088_v60  ;;  %1998 = vmatmul.msk.f32.gmra.mxu2 %vm438_vm0, %v3136_v23  ;;  %v1161_v39 = vsel %vm1160_vm1, %v3100_v30, %v1157_v34  ;;  %vm1174_vm3 = vweird.f32 %v3219_v2  ;;  %v1179_v56 = vand.u32 2147483648, %v3054_v21  ;;  %v1301_v4 = vsel %vm1298_vm2, %v1300_v48, %v1296_v43 }
 0x18f   : > { %1534 = vmatpush.msrb.mxu0 %v1307_v22  ;;  %v1166_v25 = vsel %vm1163_vm14, %v1165_v47, %v1161_v39  ;;  %v1171_v61 = vmul.f32 %v3219_v2, %v1170_v59  ;;  %v1177_v6 = vand.u32 2147483647, %v3054_v21  ;;  %v1318_v28 = vmul.f32 %v2985_v3, %v1301_v4  ;;  %v2251_v59 = vld [vmem:[%s2532_s11 + $0x58] sm:$0xff] }
 0x190   : > { %v1309_v55 = vmul.f32 %v2930_v37, %v1166_v25  ;;  %vm1173_vm4 = vweird.f32 %v3054_v21  ;;  %v1180_v5 = vor.u32 1.1754944e-38, %v1179_v56  ;;  %v2244_v21 = vld [vmem:[%s2532_s11 + $0x8] sm:$0xff] }
 0x191   : > { %1987 = vmatmul.msk.f32.gmra.mxu0 %vm438_vm0, %v3189_v54  ;;  %v1172_v30 = vadd.f32 %v3219_v2, %v1171_v61  ;;  %1638 = vmatpush.msrb.mxu3 %v1318_v28  ;;  %vm1175_vm5 = vmor %vm1173_vm4, %vm1174_vm3  ;;  %vm1178_vm6 = vcmp.eq.f32.partialorder %v1177_v6, 8.507059e+37 }
 0x192   : > { %1604 = vmatpush.msrb.mxu2 %v1309_v55 }
 0x193   : > { %v1176_v50 = vsel %vm1175_vm5, %v3219_v2, %v1172_v30  ;;  %2013 = vmatmul.msk.f32.vlgmr.msrb.gmra.mxu1 %vm438_vm0, %v2981_v46 }
 0x194   : > { %v1181_v37 = vsel %vm1178_vm6, %v1180_v5, %v1176_v50  ;;  %v2252_v5 = vld [vmem:[%s2532_s11 + $0x28] sm:$0xff] }
 0x195   : > { %v1310_v3 = vmul.f32 %v2940_v14, %v1181_v37  ;;  %v3348_v14 = vpop.permute.xlu2 %1333 }
 0x196   : > { %2004 = vmatmul.msk.f32.gmra.mxu3 %vm438_vm0, %v3136_v23  ;;  %1999 = vmatmul.msk.f32.gmra.mxu2 %vm438_vm0, %v3189_v54 }
 0x197   : > { %1639 = vmatpush.msrb.mxu3 %v1310_v3 }
 0x199   : > { %1988 = vmatmul.msk.f32.gmra.mxu0 %vm438_vm0, %v3240_v17 }
 0x19b   : > { %2014 = vmatmul.msk.f32.gmra.mxu1 %vm438_vm0, %v3041_v26 }
 0x19d   : > { %v3364_v49 = vpop.permute.xlu2 %1343 }
 0x19e   : > { %2005 = vmatmul.msk.f32.gmra.mxu3 %vm438_vm0, %v3189_v54  ;;  %2000 = vmatmul.msk.f32.gmra.mxu2 %vm438_vm0, %v3240_v17 }
 0x1a1   : > { %2007 = vmatmul.msk.f32.vlgmr.msrb.gmra.mxu0 %vm438_vm0, %v2981_v46 }
 0x1a3   : > { %2015 = vmatmul.msk.f32.gmra.mxu1 %vm438_vm0, %v3088_v60 }
 0x1a5   : > { %v3395_v1 = vpop.permute.xlu2 %1358 }
 0x1a6   : > { %2006 = vmatmul.msk.f32.gmra.mxu3 %vm438_vm0, %v3240_v17  ;;  %2019 = vmatmul.msk.f32.vlgmr.msrb.gmra.mxu2 %vm438_vm0, %v2981_v46 }
 0x1a9   : > { %2008 = vmatmul.msk.f32.gmra.mxu0 %vm438_vm0, %v3041_v26 }
 0x1ab   : > { %2016 = vmatmul.msk.f32.gmra.mxu1 %vm438_vm0, %v3136_v23 }
 0x1ae   : > { %2025 = vmatmul.msk.f32.vlgmr.msrb.gmra.mxu3 %vm438_vm0, %v2981_v46  ;;  %2020 = vmatmul.msk.f32.gmra.mxu2 %vm438_vm0, %v3041_v26 }
 0x1b1   : > { %2009 = vmatmul.msk.f32.gmra.mxu0 %vm438_vm0, %v3088_v60 }
 0x1b3   : > { %2017 = vmatmul.msk.f32.gmra.mxu1 %vm438_vm0, %v3189_v54 }
 0x1b6   : > { %2026 = vmatmul.msk.f32.gmra.mxu3 %vm438_vm0, %v3041_v26  ;;  %2021 = vmatmul.msk.f32.gmra.mxu2 %vm438_vm0, %v3088_v60 }
 0x1b9   : > { %2010 = vmatmul.msk.f32.gmra.mxu0 %vm438_vm0, %v3136_v23 }
 0x1bb   : > { %2018 = vmatmul.msk.f32.gmra.mxu1 %vm438_vm0, %v3240_v17 }
 0x1be   : > { %2027 = vmatmul.msk.f32.gmra.mxu3 %vm438_vm0, %v3088_v60  ;;  %2022 = vmatmul.msk.f32.gmra.mxu2 %vm438_vm0, %v3136_v23 }
 0x1c1   : > { %2011 = vmatmul.msk.f32.gmra.mxu0 %vm438_vm0, %v3189_v54 }
 0x1c6   : > { %2028 = vmatmul.msk.f32.gmra.mxu3 %vm438_vm0, %v3136_v23  ;;  %2023 = vmatmul.msk.f32.gmra.mxu2 %vm438_vm0, %v3189_v54  ;;  %v3357_v23 = vpop.permute.xlu1 %1338 }
 0x1c9   : > { %2012 = vmatmul.msk.f32.gmra.mxu0 %vm438_vm0, %v3240_v17 }
 0x1ce   : > { %2029 = vmatmul.msk.f32.gmra.mxu3 %vm438_vm0, %v3189_v54  ;;  %2024 = vmatmul.msk.f32.gmra.mxu2 %vm438_vm0, %v3240_v17  ;;  %v3383_v16 = vpop.permute.xlu1 %1353 }
 0x1d6   : > { %2030 = vmatmul.msk.f32.gmra.mxu3 %vm438_vm0, %v3240_v17 }
 0x1e0   : > { %v1431_v46 = vpop.f32.mrf.mxu1 }
 0x1e1   : > { %v1432_v26 = vadd.f32 %v1431_v46, %v3348_v14 }
 0x1e3   : > { %v1692_v60 = vadd.f32 %v2244_v21, %v1432_v26 }
 0x1e5   : > { %1708 = vst [vmem:[%s3354_s13 + $0x8] sm:$0xff] %v1692_v60 }
 0x1e8   : > { %v1434_v54 = vpop.f32.mrf.mxu1 }
 0x1e9   : > { %v1435_v0 = vadd.f32 %v1434_v54, %v3357_v23 }
 0x1eb   : > { %v1700_v31 = vadd.f32 %v2245_v52, %v1435_v0  ;;  %v2253_v52 = vld [vmem:[%s2532_s11 + $0x68] sm:$0xff] }
 0x1ed   : > { %1716 = vst [vmem:[%s3354_s13 + $0x48] sm:$0xff] %v1700_v31 }
 0x1ee   : > { %v1396_v35 = vpop.f32.mrf.mxu0 }
 0x1ef   : > { %v1397_v33 = vadd.f32 %v1396_v35, %v3348_v14 }
 0x1f0   : > { %v1437_v44 = vpop.f32.mrf.mxu1 }
 0x1f1   : > { %v1691_v57 = vadd.f32 %v2246_v62, %v1397_v33  ;;  %v1438_v27 = vadd.f32 %v1437_v44, %v3364_v49 }
 0x1f3   : > { %1707 = vst [vmem:[%s3354_s13] sm:$0xff] %v1691_v57 }
 0x1f4   : > { %1660 = vst [vmem:[%s3369_s18 + $0x8] sm:$0xff] %v1438_v27  ;;  %v2254_v27 = vld [vmem:[%s2532_s11 + $0x20] sm:$0xff] }
 0x1f6   : > { %v1399_v51 = vpop.f32.mrf.mxu0 }
 0x1f7   : > { %v1400_v45 = vadd.f32 %v1399_v51, %v3357_v23 }
 0x1f8   : > { %v1440_v20 = vpop.f32.mrf.mxu1 }
 0x1f9   : > { %v1466_v29 = vpop.f32.mrf.mxu2  ;;  %v1699_v42 = vadd.f32 %v2247_v41, %v1400_v45  ;;  %v1441_v2 = vadd.f32 %v1440_v20, %v3373_v53 }
 0x1fa   : > { %v1467_v32 = vadd.f32 %v1466_v29, %v3348_v14 }
 0x1fb   : > { %1715 = vst [vmem:[%s3354_s13 + $0x40] sm:$0xff] %v1699_v42 }
 0x1fc   : > { %v1693_v40 = vadd.f32 %v2248_v24, %v1467_v32  ;;  %1668 = vst [vmem:[%s3369_s18 + $0x48] sm:$0xff] %v1441_v2 }
 0x1fe   : > { %1709 = vst [vmem:[%s3354_s13 + $0x10] sm:$0xff] %v1693_v40  ;;  %v1402_v9 = vpop.f32.mrf.mxu0  ;;  %v2255_v40 = vld [vmem:[%s2532_s11 + $0x60] sm:$0xff] }
 0x1ff   : > { %v1403_v10 = vadd.f32 %v1402_v9, %v3364_v49 }
 0x200   : > { %v1443_v7 = vpop.f32.mrf.mxu1 }
 0x201   : > { %v1501_v11 = vpop.f32.mrf.mxu3  ;;  %v1469_v15 = vpop.f32.mrf.mxu2  ;;  %1659 = vst [vmem:[%s3369_s18] sm:$0xff] %v1403_v10  ;;  %v1444_v17 = vadd.f32 %v1443_v7, %v3383_v16 }
 0x202   : > { %v1502_v63 = vadd.f32 %v1501_v11, %v3348_v14  ;;  %v1470_v8 = vadd.f32 %v1469_v15, %v3357_v23  ;;  %v2256_v15 = vld [vmem:[%s2532_s11 + $0x30] sm:$0xff] }
 0x203   : > { %1676 = vst [vmem:[%s3369_s18 + $0x88] sm:$0xff] %v1444_v17 }
 0x204   : > { %v1694_v12 = vadd.f32 %v2249_v38, %v1502_v63  ;;  %v1701_v19 = vadd.f32 %v2250_v18, %v1470_v8 }
 0x206   : > { %1710 = vst [vmem:[%s3354_s13 + $0x18] sm:$0xff] %v1694_v12  ;;  %v1405_v58 = vpop.f32.mrf.mxu0 }
 0x207   : > { %1717 = vst [vmem:[%s3354_s13 + $0x50] sm:$0xff] %v1701_v19  ;;  %v1406_v13 = vadd.f32 %v1405_v58, %v3373_v53 }
 0x208   : > { %v1446_v36 = vpop.f32.mrf.mxu1 }
 0x209   : > { %v1504_v34 = vpop.f32.mrf.mxu3  ;;  %v1472_v47 = vpop.f32.mrf.mxu2  ;;  %1667 = vst [vmem:[%s3369_s18 + $0x40] sm:$0xff] %v1406_v13  ;;  %v1447_v22 = vadd.f32 %v1446_v36, %v3395_v1  ;;  %v2257_v36 = vld [vmem:[%s2532_s11 + $0x38] sm:$0xff] }
 0x20a   : > { %v1505_v43 = vadd.f32 %v1504_v34, %v3357_v23  ;;  %v1473_v48 = vadd.f32 %v1472_v47, %v3364_v49  ;;  %v2258_v47 = vld [vmem:[%s2532_s11 + $0x70] sm:$0xff] }
 0x20b   : > { %1684 = vst [vmem:[%s3369_s18 + $0xc8] sm:$0xff] %v1447_v22 }
 0x20c   : > { %v1702_v39 = vadd.f32 %v2251_v59, %v1505_v43  ;;  %1661 = vst [vmem:[%s3369_s18 + $0x10] sm:$0xff] %v1473_v48 }
 0x20e   : > { %1718 = vst [vmem:[%s3354_s13 + $0x58] sm:$0xff] %v1702_v39  ;;  %v1408_v56 = vpop.f32.mrf.mxu0 }
 0x20f   : > { %v1409_v25 = vadd.f32 %v1408_v56, %v3383_v16 }
 0x210   : > { %v1571_v4 = vpop.f32.mrf.mxu1 }
 0x211   : > { %v1507_v61 = vpop.f32.mrf.mxu3  ;;  %v1475_v6 = vpop.f32.mrf.mxu2  ;;  %1675 = vst [vmem:[%s3369_s18 + $0x80] sm:$0xff] %v1409_v25  ;;  %v1572_v55 = vadd.f32 %v1571_v4, %v3348_v14 }
 0x212   : > { %v1508_v28 = vadd.f32 %v1507_v61, %v3364_v49  ;;  %v1476_v30 = vadd.f32 %v1475_v6, %v3373_v53  ;;  %v2259_v61 = vld [vmem:[%s2532_s11 + $0x78] sm:$0xff]  ;;  %s2310_s11 = scalar_lea.hbm %s3547_s7, 256 }
 0x213   : > { %v1696_v50 = vadd.f32 %v2252_v5, %v1572_v55  ;;  %p2312_p8 = scmp.lt.s32.totalorder %s2310_s11, %s2306_s19 }
 0x214   : > { %1662 = vst [vmem:[%s3369_s18 + $0x18] sm:$0xff] %v1508_v28 }
 0x215   : > { %1669 = vst [vmem:[%s3369_s18 + $0x50] sm:$0xff] %v1476_v30  ;;  %p2313_p10 = por %p2312_p8, %p2311_p7 }
 0x216   : > { %v1411_v37 = vpop.f32.mrf.mxu0  ;;  %1712 = vst [vmem:[%s3354_s13 + $0x28] sm:$0xff] %v1696_v50 }
 0x217   : > { %v1412_v3 = vadd.f32 %v1411_v37, %v3395_v1  ;;  %p2314_p13 = pnand %p2313_p10, %p2309_p6 }
 0x218   : > { %v1574_v46 = vpop.f32.mrf.mxu1 }
 0x219   : > { %v1510_v26 = vpop.f32.mrf.mxu3  ;;  %v1478_v21 = vpop.f32.mrf.mxu2  ;;  %1683 = vst [vmem:[%s3369_s18 + $0xc0] sm:$0xff] %v1412_v3  ;;  %v1575_v60 = vadd.f32 %v1574_v46, %v3357_v23 }
 0x21a   : > { %v1511_v54 = vadd.f32 %v1510_v26, %v3373_v53  ;;  %v1479_v0 = vadd.f32 %v1478_v21, %v3383_v16 }
 0x21b   : > { %v1704_v31 = vadd.f32 %v2253_v52, %v1575_v60 }
 0x21c   : > { %1670 = vst [vmem:[%s3369_s18 + $0x58] sm:$0xff] %v1511_v54 }
 0x21d   : > { %1677 = vst [vmem:[%s3369_s18 + $0x90] sm:$0xff] %v1479_v0 }
 0x21e   : > { %v1536_v35 = vpop.f32.mrf.mxu0  ;;  %1720 = vst [vmem:[%s3354_s13 + $0x68] sm:$0xff] %v1704_v31 }
 0x21f   : > { %v1537_v33 = vadd.f32 %v1536_v35, %v3348_v14 }
 0x220   : > { %v1577_v44 = vpop.f32.mrf.mxu1 }
 0x221   : > { %v1513_v62 = vpop.f32.mrf.mxu3  ;;  %v1481_v57 = vpop.f32.mrf.mxu2  ;;  %v1695_v51 = vadd.f32 %v2254_v27, %v1537_v33  ;;  %v1578_v29 = vadd.f32 %v1577_v44, %v3364_v49 }
 0x222   : > { %v1514_v45 = vadd.f32 %v1513_v62, %v3383_v16  ;;  %v1482_v20 = vadd.f32 %v1481_v57, %v3395_v1 }
 0x223   : > { %1711 = vst [vmem:[%s3354_s13 + $0x20] sm:$0xff] %v1695_v51 }
 0x224   : > { %1678 = vst [vmem:[%s3369_s18 + $0x98] sm:$0xff] %v1514_v45 }
 0x225   : > { %1685 = vst [vmem:[%s3369_s18 + $0xd0] sm:$0xff] %v1482_v20 }
 0x226   : > { %v1539_v41 = vpop.f32.mrf.mxu0  ;;  %1664 = vst [vmem:[%s3369_s18 + $0x28] sm:$0xff] %v1578_v29 }
 0x227   : > { %v1540_v42 = vadd.f32 %v1539_v41, %v3357_v23 }
 0x228   : > { %v1580_v2 = vpop.f32.mrf.mxu1 }
 0x229   : > { %v1516_v32 = vpop.f32.mrf.mxu3  ;;  %v1606_v24 = vpop.f32.mrf.mxu2  ;;  %v1703_v9 = vadd.f32 %v2255_v40, %v1540_v42  ;;  %v1581_v10 = vadd.f32 %v1580_v2, %v3373_v53 }
 0x22a   : > { %v1517_v7 = vadd.f32 %v1516_v32, %v3395_v1  ;;  %v1607_v11 = vadd.f32 %v1606_v24, %v3348_v14 }
 0x22b   : > { %1719 = vst [vmem:[%s3354_s13 + $0x60] sm:$0xff] %v1703_v9 }
 0x22c   : > { %1686 = vst [vmem:[%s3369_s18 + $0xd8] sm:$0xff] %v1517_v7  ;;  %v1697_v17 = vadd.f32 %v2256_v15, %v1607_v11 }
 0x22d   : > { %1672 = vst [vmem:[%s3369_s18 + $0x68] sm:$0xff] %v1581_v10 }
 0x22e   : > { %1713 = vst [vmem:[%s3354_s13 + $0x30] sm:$0xff] %v1697_v17  ;;  %v1542_v63 = vpop.f32.mrf.mxu0 }
 0x22f   : > { %v1543_v8 = vadd.f32 %v1542_v63, %v3364_v49 }
 0x230   : > { %v1583_v38 = vpop.f32.mrf.mxu1 }
 0x231   : > { %v1641_v12 = vpop.f32.mrf.mxu3  ;;  %v1609_v18 = vpop.f32.mrf.mxu2  ;;  %1663 = vst [vmem:[%s3369_s18 + $0x20] sm:$0xff] %v1543_v8  ;;  %v1584_v19 = vadd.f32 %v1583_v38, %v3383_v16 }
 0x232   : > { %v1642_v58 = vadd.f32 %v1641_v12, %v3348_v14  ;;  %v1610_v13 = vadd.f32 %v1609_v18, %v3357_v23 }
 0x233   : > { %1680 = vst [vmem:[%s3369_s18 + $0xa8] sm:$0xff] %v1584_v19 }
 0x234   : > { %v1698_v34 = vadd.f32 %v2257_v36, %v1642_v58  ;;  %v1705_v22 = vadd.f32 %v2258_v47, %v1610_v13 }
 0x236   : > { %1714 = vst [vmem:[%s3354_s13 + $0x38] sm:$0xff] %v1698_v34  ;;  %v1545_v43 = vpop.f32.mrf.mxu0 }
 0x237   : > { %1721 = vst [vmem:[%s3354_s13 + $0x70] sm:$0xff] %v1705_v22  ;;  %v1546_v14 = vadd.f32 %v1545_v43, %v3373_v53 }
 0x238   : > { %v1586_v48 = vpop.f32.mrf.mxu1 }
 0x239   : > { %v1644_v59 = vpop.f32.mrf.mxu3  ;;  %v1612_v39 = vpop.f32.mrf.mxu2  ;;  %1671 = vst [vmem:[%s3369_s18 + $0x60] sm:$0xff] %v1546_v14  ;;  %v1587_v56 = vadd.f32 %v1586_v48, %v3395_v1 }
 0x23a   : > { %v1645_v25 = vadd.f32 %v1644_v59, %v3357_v23  ;;  %v1613_v4 = vadd.f32 %v1612_v39, %v3364_v49 }
 0x23b   : > { %1688 = vst [vmem:[%s3369_s18 + $0xe8] sm:$0xff] %v1587_v56 }
 0x23c   : > { %v1706_v6 = vadd.f32 %v2259_v61, %v1645_v25  ;;  %1665 = vst [vmem:[%s3369_s18 + $0x30] sm:$0xff] %v1613_v4 }
 0x23e   : > { %1722 = vst [vmem:[%s3354_s13 + $0x78] sm:$0xff] %v1706_v6  ;;  %v1548_v55 = vpop.f32.mrf.mxu0 }
 0x23f   : > { %v1549_v28 = vadd.f32 %v1548_v55, %v3383_v16 }
 0x240   : > { %2317 = shalt.err (!%p2314_p13)
}
 0x241   : > { %s2410_s13 = smov 1024   ;;  %s2411_s22 = smov 64   ;;  %v1647_v23 = vpop.f32.mrf.mxu3  ;;  %v1615_v30 = vpop.f32.mrf.mxu2  ;;  %1679 = vst [vmem:[%s3369_s18 + $0xa0] sm:$0xff] %v1549_v28 }
 0x242   : > { %2045 = dma.vmem_to_hbm [thread:$0]  (%p2503_p9), %s1763_s30, 2048, %s1765_s12, %s1729_s8, %s2410_s13, %s2410_s13, %s2411_s22   ;;  %v1648_v5 = vadd.f32 %v1647_v23, %v3364_v49  ;;  %v1616_v50 = vadd.f32 %v1615_v30, %v3373_v53 }
 0x243   : > { %s2040_s23 = sshll.u32 %s2396_s27, 8  ;;  %s1743_s10 = sshll.u32 %s3369_s18, 4  ;;  %s1744_s10 = int_to_ptr.vmem [resolvable:$true] %s1743_s10 }
 0x244   : > { %1666 = vst [vmem:[%s3369_s18 + $0x38] sm:$0xff] %v1648_v5  ;;  %s1742_s8 = scalar_lea.hbm %s3546_s6, %s2040_s23  ;;  %s1724_s27 = scalar_lea.sflag [#allocation4], %s2526_s28 }
 0x245   : > { %1673 = vst [vmem:[%s3369_s18 + $0x70] sm:$0xff] %v1616_v50  ;;  %s1745_s19 = sshll.u32 %s1742_s8, 4  ;;  %s2338_s21 = scalar_lea.hbm %s3546_s6, 512  ;;  %s1746_s19 = int_to_ptr.hbm [resolvable:$true] %s1745_s19 }
 0x246   : > { %v1551_v37 = vpop.f32.mrf.mxu0  ;;  %s2332_s9 = sshra.s32 %s1746_s19, 4  ;;  %s2333_s9 = int_to_ptr.hbm [resolvable:$true] %s2332_s9 }
 0x247   : > { %v1552_v3 = vadd.f32 %v1551_v37, %v3395_v1  ;;  %s2334_s17 = scalar_lea.hbm %s2333_s9, 256  ;;  %p2339_p3 = scmp.lt.s32.totalorder %s2333_s9, %s3546_s6 }
 0x248   : > { %p2335_p0 = scmp.ne.s32.totalorder %s2333_s9, %s2334_s17  ;;  %p2340_p4 = scmp.lt.s32.totalorder %s2338_s21, %s2334_s17 }
 0x249   : > { %v1650_v46 = vpop.f32.mrf.mxu3  ;;  %v1618_v26 = vpop.f32.mrf.mxu2  ;;  %1687 = vst [vmem:[%s3369_s18 + $0xe0] sm:$0xff] %v1552_v3 }
 0x24a   : > { %v1651_v21 = vadd.f32 %v1650_v46, %v3373_v53  ;;  %v1619_v60 = vadd.f32 %v1618_v26, %v3383_v16  ;;  %p2336_p1 = pnand %p2335_p0, %p2503_p9  ;;  %p2341_p5 = por %p2340_p4, %p2339_p3 }
 0x24c   : > { %1674 = vst [vmem:[%s3369_s18 + $0x78] sm:$0xff] %v1651_v21  ;;  %p2337_p2 = pneg %p2336_p1 }
 0x24d   : > { %1681 = vst [vmem:[%s3369_s18 + $0xb0] sm:$0xff] %v1619_v60 }
 0x24e   : > { %p2342_p6 = pnand %p2341_p5, %p2337_p2 }
 0x251   : > { %v1653_v49 = vpop.f32.mrf.mxu3  ;;  %v1621_v54 = vpop.f32.mrf.mxu2 }
 0x252   : > { %v1654_v0 = vadd.f32 %v1653_v49, %v3383_v16  ;;  %v1622_v52 = vadd.f32 %v1621_v54, %v3395_v1 }
 0x254   : > { %1682 = vst [vmem:[%s3369_s18 + $0xb8] sm:$0xff] %v1654_v0 }
 0x255   : > { %1689 = vst [vmem:[%s3369_s18 + $0xf0] sm:$0xff] %v1622_v52 }
 0x259   : > { %v1656_v53 = vpop.f32.mrf.mxu3 }
 0x25a   : > { %v1657_v31 = vadd.f32 %v1656_v53, %v3395_v1 }
 0x25c   : > { %1690 = vst [vmem:[%s3369_s18 + $0xf8] sm:$0xff] %v1657_v31 }
 0x25d   : > { %2345 = shalt.err (!%p2342_p6)
}
 0x25e   : > { %2044 = dma.vmem_to_hbm [thread:$0]  (%p2503_p9), %s1744_s10, 4096, %s1746_s19, %s1724_s27, %s2410_s13, %s2410_s13, %s2411_s22  }
 0x25f PF: > { %s1779_s28 = sand.u32 1, %s2384_s24   ;;  %p2053_p7 = pnand %p1891_p12, %p2510_p11 }
 0x260   : > { %s1780_s18 = scalar_lea.sflag [#allocation4], %s1779_s28 }
 0x261   : > { %p2054_p8 = pneg %p2053_p7 }
 0x263   : > { %2375 = dma.done.wait (%p2054_p8), %s1780_s18, 4096  }
 0x264   : > { %2377 = vsyncadd (%p2054_p8), %s1780_s18, 4294963200  ;;  %s1790_s12 = scalar_lea.sflag [#allocation7], %s1779_s28 }
 0x265   : > { %2379 = dma.done.wait (%p2054_p8), %s1790_s12, 2048  }
 0x266   : > { %2381 = vsyncadd (%p2054_p8), %s1790_s12, 4294965248  ;;  %s27_s29 = sadd.s32 1, %s2404_s29   ;;  %s3576_s27 = sld [smem:[#allocation11_spill]] }
 0x267   : > { %p24_p10 = scmp.ge.s32.totalorder %s27_s29, 4   ;;  %s3577_s28 = sld [smem:[#allocation12_spill]] }
 0x268   : > { %s3578_s24 = smov %s2388_s25  ;;  %s3579_s25 = smov %s2392_s26 }
 0x269   : > { %s3580_s26 = smov %s2508_s15  ;;  %26 = sbr.rel (!%p24_p10) target bundleno = 8 (0x8), region = 106 }
 0x26e   :  { %1796 = vsyncpa [#allocation3], 1 }
 0x26f   :  { %1798 = vsyncpa [#allocation3 + $0x1], 1 }
 0x270   :  { %1799 = vsyncpa [#allocation4], 1 }
 0x271   :  { %1801 = vsyncpa [#allocation4 + $0x1], 1 }
 0x272   :  { %1802 = vsyncpa [#allocation7], 1 }
 0x273   :  { %1804 = vsyncpa [#allocation7 + $0x1], 1 }

</bundles_post_ra>
